<compile_context>
chip_gen: v7x
topology: tpu7x:2x2x1
jax: 0.10.0
libtpu: 0.0.40
codegen_flags: <defaults>
</compile_context>

<pallas_src>
import functools
import math

import jax
import jax.numpy as jnp
from jax.experimental import pallas as pl
from jax.experimental.pallas import tpu as pltpu


_WEIGHT_ORDER = ("wqkv", "bqkv", "wout", "bout", "g1", "b1",
                 "w1", "bf1", "w2", "bf2", "g2", "b2")


def _layernorm(x, gamma, beta, eps=1e-5):
    """PyTorch LayerNorm over the last axis (biased variance), f32 statistics."""
    mu = jnp.mean(x, axis=-1, keepdims=True)
    var = jnp.mean((x - mu) ** 2, axis=-1, keepdims=True)
    return (x - mu) * jax.lax.rsqrt(var + eps) * gamma + beta


# ----------------------------- fused kernel --------------------------------------

def fused_encoder_kernel(x_ref, wqkv_ref, bqkv_ref, wout_ref, bout_ref,
                         g1_ref, b1_ref, w1_ref, bf1_ref, w2_ref, bf2_ref,
                         g2_ref, b2_ref, fg_ref, fb_ref, o_ref, carry_ref,
                         *, nhead):
    """One (batch_block, layer) grid step; f32 VMEM scratch is the layer carry."""
    layer = pl.program_id(1)
    num_layers = pl.num_programs(1)

    bt, seq, emb = o_ref.shape
    dh = emb // nhead
    rows = bt * seq
    cdt = jnp.bfloat16                      # MXU operand dtype, f32 accumulation

    # Seed the f32 carry with the input block on the first layer step.
    @pl.when(layer == 0)
    def _():
        carry_ref[...] = x_ref[...].reshape(rows, emb).astype(jnp.float32)

    x = carry_ref[...]                                              # (R, E) f32

    # --- QKV: single lane-dense (R,E)@(E,3E) matmul; softmax scale pre-folded ----
    qkv = jnp.dot(x.astype(cdt), wqkv_ref[0],
                  preferred_element_type=jnp.float32) + bqkv_ref[0]  # (R, 3E)
    q = qkv[:, 0 * emb:1 * emb]
    k = qkv[:, 1 * emb:2 * emb]
    v = qkv[:, 2 * emb:3 * emb]

    # --- attention: static per-head loop, batched over the batch tile -----------
    # (small FLOP fraction; keeps layouts transpose-free — see review item on
    #  not over-optimizing the tiny SxS tiles)
    ctx_heads = []
    for h in range(nhead):
        lo, hi = h * dh, (h + 1) * dh
        q_h = q[:, lo:hi].reshape(bt, seq, dh).astype(cdt)
        k_h = k[:, lo:hi].reshape(bt, seq, dh).astype(cdt)
        v_h = v[:, lo:hi].reshape(bt, seq, dh).astype(cdt)
        s_h = jnp.einsum("bqd,bkd->bqk", q_h, k_h,
                         preferred_element_type=jnp.float32)         # (Bt,S,S)
        s_h = s_h - jnp.max(s_h, axis=-1, keepdims=True)
        p_h = jnp.exp(s_h)
        p_h = p_h * pl.reciprocal(jnp.sum(p_h, axis=-1, keepdims=True),
                                  approx=True)
        c_h = jnp.einsum("bqk,bkd->bqd", p_h.astype(cdt), v_h,
                         preferred_element_type=jnp.float32)         # (Bt,S,dh)
        ctx_heads.append(c_h.reshape(rows, dh))

    # Head-major lane concat == torch concat(heads); one K=E MXU contraction folds
    # the head reduction into the matmul accumulator (no (H,R,E) f32 intermediate).
    ctx = jnp.concatenate(ctx_heads, axis=-1)                        # (R, E)
    attn_out = jnp.dot(ctx.astype(cdt), wout_ref[0],
                       preferred_element_type=jnp.float32) + bout_ref[0]

    # --- residual + norm1 --------------------------------------------------------
    x1 = _layernorm(x + attn_out, g1_ref[0], b1_ref[0])

    # --- feed-forward (ReLU), full-depth lane-dense matmuls ----------------------
    h1 = jnp.dot(x1.astype(cdt), w1_ref[0],
                 preferred_element_type=jnp.float32) + bf1_ref[0]
    h1 = jnp.maximum(h1, 0.0)
    h2 = jnp.dot(h1.astype(cdt), w2_ref[0],
                 preferred_element_type=jnp.float32) + bf2_ref[0]

    # --- residual + norm2 -> carry / final LN fused in registers ----------------
    y = _layernorm(x1 + h2, g2_ref[0], b2_ref[0])                    # (R, E) f32

    @pl.when(layer < num_layers - 1)
    def _():
        carry_ref[...] = y

    @pl.when(layer == num_layers - 1)
    def _():
        # Final encoder LayerNorm applied in registers, single o_ref store.
        z = _layernorm(y, fg_ref[...], fb_ref[...])
        o_ref[...] = z.reshape(bt, seq, emb).astype(o_ref.dtype)


# ----------------------------- host-side weight packing --------------------------

def pack_layer_params(lp, nhead, wdt=jnp.bfloat16):
    """PyTorch-layout layer params -> kernel layout.

    Pre-transposed, matmul weights in bf16, 1/sqrt(dh) folded into the Q block of
    the fused QKV weight + bias.  Done once on the host: no in-kernel transposes.
    """
    emb = lp["wout"].shape[0]
    ffn = lp["w1"].shape[0]
    dh = emb // nhead
    scale = 1.0 / math.sqrt(dh)

    win, bin_ = lp["win"], lp["bin"]                 # (3E, E) rows [Q;K;V], (3E,)
    wq_scaled = win[:emb] * scale
    bq_scaled = bin_[:emb] * scale
    wqkv = jnp.concatenate([wq_scaled, win[emb:]], axis=0).T          # (E, 3E)
    bqkv = jnp.concatenate([bq_scaled, bin_[emb:]]).reshape(1, 3 * emb)

    f32 = jnp.float32
    return dict(
        wqkv=wqkv.astype(wdt),                        # (E, 3E)
        bqkv=bqkv.astype(f32),                        # (1, 3E)
        wout=lp["wout"].T.astype(wdt),                # (E, E)  concat-heads -> E
        bout=lp["bout"].reshape(1, emb).astype(f32),
        g1=lp["g1"].reshape(1, emb).astype(f32),
        b1=lp["b1"].reshape(1, emb).astype(f32),
        w1=lp["w1"].T.astype(wdt),                    # (E, F)
        bf1=lp["bf1"].reshape(1, ffn).astype(f32),
        w2=lp["w2"].T.astype(wdt),                    # (F, E)
        bf2=lp["bf2"].reshape(1, emb).astype(f32),
        g2=lp["g2"].reshape(1, emb).astype(f32),
        b2=lp["b2"].reshape(1, emb).astype(f32),
    )


def pack_encoder_params(params, nhead):
    per_layer = [pack_layer_params(lp, nhead) for lp in params["layers"]]
    stacked = {k: jnp.stack([p[k] for p in per_layer], axis=0) for k in _WEIGHT_ORDER}
    fg = params["final_g"].reshape(1, -1).astype(jnp.float32)
    fb = params["final_b"].reshape(1, -1).astype(jnp.float32)
    return stacked, fg, fb


# ----------------------------- wrapper --------------------------------------------

def _vmem_budget_bytes():
    """~75% of physical VMEM: ~96 MiB on v5e/v6e (128 MiB), ~48 MiB on v7x (64 MiB)."""
    try:
        phys = int(pltpu.get_tpu_info().vmem_capacity_bytes)
    except Exception:
        phys = 64 * 1024 * 1024          # conservative fallback (v7x physical)
    return int(phys) * 3 // 4


def _pick_block_batch(n, s, e, f, nh, vmem_budget):
    """Largest divisor of n whose activation working set fits ~half the budget.

    No forced halving: v5e/v6e are single-TensorCore, and on v7x a small batch is
    weight-streaming bound, so one larger block per chip is the right trade.
    """
    # rough f32 bytes live per activation row inside one layer step
    per_row = 4 * (2 * e        # carry + residual
                   + 3 * e      # qkv
                   + e          # concatenated context
                   + f          # ffn hidden
                   + 2 * nh * s)  # per-head scores / probs
    target_rows = max(s, (vmem_budget // 2) // max(per_row, 1))
    bt = max(1, min(n, target_rows // max(s, 1)))
    while n % bt:                # divisor of n -> no padded tail blocks
        bt -= 1
    return bt


def _layer_spec(shape):
    nd = len(shape)
    return pl.BlockSpec((1,) + tuple(shape[1:]),
                        lambda b, l, nd=nd: (l,) + (0,) * (nd - 1))


def _rep_spec(shape):
    nd = len(shape)
    return pl.BlockSpec(tuple(shape), lambda b, l, nd=nd: (0,) * nd)


def _cost_estimate(s, e, f, nh, num_layers, n_blocks, bt, weight_bytes, act_bytes):
    rows = bt * s
    dh = e // nh
    per_step = (2 * rows * e * 3 * e          # qkv projection
                + 2 * rows * e * e            # out projection (K=E, head-folded)
                + 4 * rows * e * f            # two FFN matmuls
                + 4 * nh * bt * s * s * dh)   # attention score + context
    flops = per_step * n_blocks * num_layers
    transcend = nh * bt * s * s * n_blocks * num_layers      # softmax exp
    bytes_accessed = act_bytes + weight_bytes * n_blocks     # weights re-streamed per block
    return pl.CostEstimate(flops=int(flops), transcendentals=int(transcend),
                           bytes_accessed=int(bytes_accessed))


def mention_context_encoder_forward(left_context, right_context, sentence_context,
                                    kernel_params, nhead):
    """Matches Mention_context_encoder.forward (eval mode).

    Inputs are seq-first (S, N_i, E); torch.cat(dim=1) concatenates the batch axis.
    Returns (S, N_sentence + N_left + N_right, E).
    """
    stacked, fg, fb = kernel_params
    x = jnp.concatenate([sentence_context, left_context, right_context], axis=1)
    xb = jnp.transpose(x, (1, 0, 2))                 # (N, S, E) batch-major
    n, s, e = xb.shape
    num_layers = stacked["wqkv"].shape[0]
    f = stacked["w1"].shape[2]

    vmem_budget = _vmem_budget_bytes()
    bt = _pick_block_batch(n, s, e, f, nhead, vmem_budget)
    n_blocks = n // bt

    in_specs = [pl.BlockSpec((bt, s, e), lambda b, l: (b, 0, 0))]
    in_specs += [_layer_spec(stacked[kname].shape) for kname in _WEIGHT_ORDER]
    in_specs += [_rep_spec(fg.shape), _rep_spec(fb.shape)]

    weight_bytes = sum(int(stacked[kname].size) * stacked[kname].dtype.itemsize
                       for kname in _WEIGHT_ORDER)
    weight_bytes += int(fg.size) * 4 + int(fb.size) * 4
    act_bytes = 2 * n * s * e * xb.dtype.itemsize

    out = pl.pallas_call(
        functools.partial(fused_encoder_kernel, nhead=nhead),
        out_shape=jax.ShapeDtypeStruct((n, s, e), xb.dtype),
        grid=(n_blocks, num_layers),
        in_specs=in_specs,
        out_specs=pl.BlockSpec((bt, s, e), lambda b, l: (b, 0, 0)),
        scratch_shapes=[pltpu.VMEM((bt * s, e), jnp.float32)],   # f32 layer carry
        compiler_params=pltpu.CompilerParams(
            dimension_semantics=("parallel", "arbitrary"),
            vmem_limit_bytes=vmem_budget,
        ),
        cost_estimate=_cost_estimate(s, e, f, nhead, num_layers, n_blocks, bt,
                                     weight_bytes, act_bytes),
    )(xb, *[stacked[kname] for kname in _WEIGHT_ORDER], fg, fb)
    return jnp.transpose(out, (1, 0, 2))             # back to (S, N, E)


# ----------------------------- parameter init (PyTorch layout) --------------------

def init_torch_layout_params(key, d_model, nhead, dim_feedforward, num_layer):
    e, f = d_model, dim_feedforward
    layers = []
    for _ in range(num_layer):
        key, k0, k1, k2, k3 = jax.random.split(key, 5)
        layers.append(dict(
            win=0.02 * jax.random.normal(k0, (3 * e, e), jnp.float32),  # in_proj_weight
            bin=jnp.zeros((3 * e,), jnp.float32),
            wout=0.02 * jax.random.normal(k1, (e, e), jnp.float32),     # out_proj.weight
            bout=jnp.zeros((e,), jnp.float32),
            g1=jnp.ones((e,), jnp.float32), b1=jnp.zeros((e,), jnp.float32),
            w1=0.02 * jax.random.normal(k2, (f, e), jnp.float32),       # linear1.weight
            bf1=jnp.zeros((f,), jnp.float32),
            w2=0.02 * jax.random.normal(k3, (e, f), jnp.float32),       # linear2.weight
            bf2=jnp.zeros((e,), jnp.float32),
            g2=jnp.ones((e,), jnp.float32), b2=jnp.zeros((e,), jnp.float32),
        ))
    params = dict(layers=layers,
                  final_g=jnp.ones((e,), jnp.float32),
                  final_b=jnp.zeros((e,), jnp.float32))
    return params, key


# ----------------------------- pure-JAX reference (tolerance check) ----------------

def reference_forward(left_context, right_context, sentence_context, params, nhead):
    x = jnp.concatenate([sentence_context, left_context, right_context], axis=1)
    x = jnp.transpose(x, (1, 0, 2))                  # (N, S, E)
    n, s, e = x.shape
    dh = e // nhead

    def ln(v, g, b, eps=1e-5):
        mu = jnp.mean(v, -1, keepdims=True)
        var = jnp.mean((v - mu) ** 2, -1, keepdims=True)
        return (v - mu) / jnp.sqrt(var + eps) * g + b

    for lp in params["layers"]:
        qkv = jnp.einsum("nse,fe->nsf", x, lp["win"]) + lp["bin"]
        q, k, v = qkv[..., :e], qkv[..., e:2 * e], qkv[..., 2 * e:]
        q = q.reshape(n, s, nhead, dh) / math.sqrt(dh)
        k = k.reshape(n, s, nhead, dh)
        v = v.reshape(n, s, nhead, dh)
        sc = jnp.einsum("nqhd,nkhd->nhqk", q, k)
        p = jax.nn.softmax(sc, axis=-1)
        ctx = jnp.einsum("nhqk,nkhd->nqhd", p, v).reshape(n, s, e)
        attn = jnp.einsum("nse,fe->nsf", ctx, lp["wout"]) + lp["bout"]
        x = ln(x + attn, lp["g1"], lp["b1"])
        h = jax.nn.relu(jnp.einsum("nse,fe->nsf", x, lp["w1"]) + lp["bf1"])
        h = jnp.einsum("nsf,ef->nse", h, lp["w2"]) + lp["bf2"]
        x = ln(x + h, lp["g2"], lp["b2"])
    x = ln(x, params["final_g"], params["final_b"])
    return jnp.transpose(x, (1, 0, 2))


# ----------------------------- main -------------------------------------------------

if __name__ == "__main__":
    d_model, nhead, dim_feedforward, num_layer = 32, 4, 64, 2
    seq_len, n_sentence, n_left, n_right = 8, 2, 1, 1

    key = jax.random.PRNGKey(0)
    params, key = init_torch_layout_params(key, d_model, nhead, dim_feedforward,
                                           num_layer)
    kernel_params = pack_encoder_params(params, nhead)

    key, ks, kl, kr = jax.random.split(key, 4)
    sentence_context = jax.random.normal(ks, (seq_len, n_sentence, d_model), jnp.float32)
    left_context = jax.random.normal(kl, (seq_len, n_left, d_model), jnp.float32)
    right_context = jax.random.normal(kr, (seq_len, n_right, d_model), jnp.float32)

    out = mention_context_encoder_forward(left_context, right_context,
                                          sentence_context, kernel_params, nhead)
    out = jax.block_until_ready(out)
    assert out.shape == (seq_len, n_sentence + n_left + n_right, d_model)
    assert bool(jnp.all(jnp.isfinite(out)))

    # Loose tolerance: bf16 MXU operands + approx softmax reciprocal vs f32 reference.
    ref = reference_forward(left_context, right_context, sentence_context,
                            params, nhead)
    max_err = float(jnp.max(jnp.abs(out - ref)))
    assert max_err < 1e-1, f"max abs err vs reference: {max_err}"
    print("KERNEL_OK")
</pallas_src>

<mosaic_0001>
module attributes {stable_mosaic.version = 11 : i64} {
  func.func @fused_encoder_kernel(%arg0: i32, %arg1: i32, %arg2: memref<4x8x32xf32, #tpu.memory_space<vmem>>, %arg3: memref<1x32x96xbf16, #tpu.memory_space<vmem>>, %arg4: memref<1x1x96xf32, #tpu.memory_space<vmem>>, %arg5: memref<1x32x32xbf16, #tpu.memory_space<vmem>>, %arg6: memref<1x1x32xf32, #tpu.memory_space<vmem>>, %arg7: memref<1x1x32xf32, #tpu.memory_space<vmem>>, %arg8: memref<1x1x32xf32, #tpu.memory_space<vmem>>, %arg9: memref<1x32x64xbf16, #tpu.memory_space<vmem>>, %arg10: memref<1x1x64xf32, #tpu.memory_space<vmem>>, %arg11: memref<1x64x32xbf16, #tpu.memory_space<vmem>>, %arg12: memref<1x1x32xf32, #tpu.memory_space<vmem>>, %arg13: memref<1x1x32xf32, #tpu.memory_space<vmem>>, %arg14: memref<1x1x32xf32, #tpu.memory_space<vmem>>, %arg15: memref<1x32xf32, #tpu.memory_space<vmem>>, %arg16: memref<1x32xf32, #tpu.memory_space<vmem>>, %arg17: memref<4x8x32xf32, #tpu.memory_space<vmem>>, %arg18: memref<32x32xf32, #tpu.memory_space<vmem>>) attributes {dimension_semantics = [#tpu.dimension_semantics<parallel>, #tpu.dimension_semantics<arbitrary>], iteration_bounds = array<i64: 1, 2>, scalar_prefetch = 0 : i64, scratch_operands = 1 : i64, tpu.core_type = #tpu.core_type<tc>, window_params = [{transform_indices = @transform_0, window_bounds = array<i64: 4, 8, 32>}, {transform_indices = @transform_1, window_bounds = array<i64: 1, 32, 96>}, {transform_indices = @transform_2, window_bounds = array<i64: 1, 1, 96>}, {transform_indices = @transform_3, window_bounds = array<i64: 1, 32, 32>}, {transform_indices = @transform_4, window_bounds = array<i64: 1, 1, 32>}, {transform_indices = @transform_5, window_bounds = array<i64: 1, 1, 32>}, {transform_indices = @transform_6, window_bounds = array<i64: 1, 1, 32>}, {transform_indices = @transform_7, window_bounds = array<i64: 1, 32, 64>}, {transform_indices = @transform_8, window_bounds = array<i64: 1, 1, 64>}, {transform_indices = @transform_9, window_bounds = array<i64: 1, 64, 32>}, {transform_indices = @transform_10, window_bounds = array<i64: 1, 1, 32>}, {transform_indices = @transform_11, window_bounds = array<i64: 1, 1, 32>}, {transform_indices = @transform_12, window_bounds = array<i64: 1, 1, 32>}, {pipeline_mode = #tpu.pipeline_mode<synchronous>, transform_indices = @transform_13, window_bounds = array<i64: 1, 32>}, {pipeline_mode = #tpu.pipeline_mode<synchronous>, transform_indices = @transform_14, window_bounds = array<i64: 1, 32>}, {transform_indices = @transform_15, window_bounds = array<i64: 4, 8, 32>}]} {
    %c0_i32 = arith.constant 0 : i32
    %0 = arith.cmpi eq, %arg1, %c0_i32 : i32
    %1 = arith.extui %0 : i1 to i32
    %c0_i32_0 = arith.constant 0 : i32
    %2 = arith.cmpi ne, %1, %c0_i32_0 : i32
    scf.if %2 {
      %c0_71 = arith.constant 0 : index
      %c0_72 = arith.constant 0 : index
      %c0_73 = arith.constant 0 : index
      %194 = vector.load %arg2[%c0_71, %c0_72, %c0_73] : memref<4x8x32xf32, #tpu.memory_space<vmem>>, vector<4x8x32xf32>
      %195 = vector.shape_cast %194 : vector<4x8x32xf32> to vector<32x32xf32>
      %c0_74 = arith.constant 0 : index
      %c0_75 = arith.constant 0 : index
      %196 = vector.load %arg18[%c0_74, %c0_75] : memref<32x32xf32, #tpu.memory_space<vmem>>, vector<32x32xf32>
      tpu.vector_store %arg18[%c0_74, %c0_75], %195 {strides = array<i32>} : memref<32x32xf32, #tpu.memory_space<vmem>>, vector<32x32xf32>,
    } else {
    }
    %c0 = arith.constant 0 : index
    %c0_1 = arith.constant 0 : index
    %3 = vector.load %arg18[%c0, %c0_1] : memref<32x32xf32, #tpu.memory_space<vmem>>, vector<32x32xf32>
    %4 = arith.truncf %3 : vector<32x32xf32> to vector<32x32xbf16>
    %c0_2 = arith.constant 0 : index
    %c0_3 = arith.constant 0 : index
    %c0_4 = arith.constant 0 : index
    %5 = vector.load %arg3[%c0_2, %c0_3, %c0_4] : memref<1x32x96xbf16, #tpu.memory_space<vmem>>, vector<1x32x96xbf16>
    %6 = vector.shape_cast %5 : vector<1x32x96xbf16> to vector<32x96xbf16>
    %cst = arith.constant dense<0.000000e+00> : vector<32x96xf32>
    %7 = tpu.matmul %4, %6, %cst {dimension_numbers = #tpu.dot_dimension_numbers<[1], [0], [0], [1], [0, 0, 1, 1], [], []>} : vector<32x32xbf16>, vector<32x96xbf16>, vector<32x96xf32> -> vector<32x96xf32>
    %c0_5 = arith.constant 0 : index
    %c0_6 = arith.constant 0 : index
    %c0_7 = arith.constant 0 : index
    %8 = vector.load %arg4[%c0_5, %c0_6, %c0_7] : memref<1x1x96xf32, #tpu.memory_space<vmem>>, vector<1x1x96xf32>
    %9 = vector.shape_cast %8 : vector<1x1x96xf32> to vector<1x96xf32>
    %10 = vector.broadcast %9 : vector<1x96xf32> to vector<32x96xf32>
    %11 = arith.addf %7, %10 : vector<32x96xf32>
    %12 = vector.extract_strided_slice %11 {offsets = [0, 0], sizes = [32, 32], strides = [1, 1]} : vector<32x96xf32> to vector<32x32xf32>
    %13 = vector.extract_strided_slice %11 {offsets = [0, 32], sizes = [32, 32], strides = [1, 1]} : vector<32x96xf32> to vector<32x32xf32>
    %14 = vector.extract_strided_slice %11 {offsets = [0, 64], sizes = [32, 32], strides = [1, 1]} : vector<32x96xf32> to vector<32x32xf32>
    %15 = vector.extract_strided_slice %12 {offsets = [0, 0], sizes = [32, 8], strides = [1, 1]} : vector<32x32xf32> to vector<32x8xf32>
    %16 = vector.shape_cast %15 : vector<32x8xf32> to vector<4x8x8xf32>
    %17 = arith.truncf %16 : vector<4x8x8xf32> to vector<4x8x8xbf16>
    %18 = vector.extract_strided_slice %13 {offsets = [0, 0], sizes = [32, 8], strides = [1, 1]} : vector<32x32xf32> to vector<32x8xf32>
    %19 = vector.shape_cast %18 : vector<32x8xf32> to vector<4x8x8xf32>
    %20 = arith.truncf %19 : vector<4x8x8xf32> to vector<4x8x8xbf16>
    %21 = vector.extract_strided_slice %14 {offsets = [0, 0], sizes = [32, 8], strides = [1, 1]} : vector<32x32xf32> to vector<32x8xf32>
    %22 = vector.shape_cast %21 : vector<32x8xf32> to vector<4x8x8xf32>
    %23 = arith.truncf %22 : vector<4x8x8xf32> to vector<4x8x8xbf16>
    "tpu.trace_start"() <{level = 10 : i32, message = "bqd,bkd->bqk"}> : () -> ()
    %cst_8 = arith.constant dense<0.000000e+00> : vector<4x8x8xf32>
    %24 = tpu.matmul %17, %20, %cst_8 {dimension_numbers = #tpu.dot_dimension_numbers<[2], [2], [1], [1], [0, 0, 0, 1, 1, 1], [0], [0]>} : vector<4x8x8xbf16>, vector<4x8x8xbf16>, vector<4x8x8xf32> -> vector<4x8x8xf32>
    "tpu.trace_stop"() : () -> ()
    %cst_9 = arith.constant dense<0xFF800000> : vector<4x8xf32>
    %25 = vector.multi_reduction <maximumf>, %24, %cst_9 [2] : vector<4x8x8xf32> to vector<4x8xf32>
    %26 = vector.shape_cast %25 : vector<4x8xf32> to vector<4x8x1xf32>
    %27 = vector.broadcast %26 : vector<4x8x1xf32> to vector<4x8x8xf32>
    %28 = arith.subf %24, %27 : vector<4x8x8xf32>
    %29 = math.exp %28 : vector<4x8x8xf32>
    %cst_10 = arith.constant dense<0.000000e+00> : vector<4x8xf32>
    %30 = vector.multi_reduction <add>, %29, %cst_10 [2] : vector<4x8x8xf32> to vector<4x8xf32>
    %31 = vector.shape_cast %30 : vector<4x8xf32> to vector<4x8x1xf32>
    %32 = tpu.reciprocal %31 {approx = true} : vector<4x8x1xf32> -> vector<4x8x1xf32>
    %33 = vector.broadcast %32 : vector<4x8x1xf32> to vector<4x8x8xf32>
    %34 = arith.mulf %29, %33 : vector<4x8x8xf32>
    %35 = arith.truncf %34 : vector<4x8x8xf32> to vector<4x8x8xbf16>
    "tpu.trace_start"() <{level = 10 : i32, message = "bqk,bkd->bqd"}> : () -> ()
    %cst_11 = arith.constant dense<0.000000e+00> : vector<4x8x8xf32>
    %36 = tpu.matmul %35, %23, %cst_11 {dimension_numbers = #tpu.dot_dimension_numbers<[2], [1], [1], [2], [0, 0, 0, 1, 1, 2], [0], [0]>} : vector<4x8x8xbf16>, vector<4x8x8xbf16>, vector<4x8x8xf32> -> vector<4x8x8xf32>
    "tpu.trace_stop"() : () -> ()
    %37 = vector.shape_cast %36 : vector<4x8x8xf32> to vector<32x8xf32>
    %38 = vector.extract_strided_slice %12 {offsets = [0, 8], sizes = [32, 8], strides = [1, 1]} : vector<32x32xf32> to vector<32x8xf32>
    %39 = vector.shape_cast %38 : vector<32x8xf32> to vector<4x8x8xf32>
    %40 = arith.truncf %39 : vector<4x8x8xf32> to vector<4x8x8xbf16>
    %41 = vector.extract_strided_slice %13 {offsets = [0, 8], sizes = [32, 8], strides = [1, 1]} : vector<32x32xf32> to vector<32x8xf32>
    %42 = vector.shape_cast %41 : vector<32x8xf32> to vector<4x8x8xf32>
    %43 = arith.truncf %42 : vector<4x8x8xf32> to vector<4x8x8xbf16>
    %44 = vector.extract_strided_slice %14 {offsets = [0, 8], sizes = [32, 8], strides = [1, 1]} : vector<32x32xf32> to vector<32x8xf32>
    %45 = vector.shape_cast %44 : vector<32x8xf32> to vector<4x8x8xf32>
    %46 = arith.truncf %45 : vector<4x8x8xf32> to vector<4x8x8xbf16>
    "tpu.trace_start"() <{level = 10 : i32, message = "bqd,bkd->bqk"}> : () -> ()
    %cst_12 = arith.constant dense<0.000000e+00> : vector<4x8x8xf32>
    %47 = tpu.matmul %40, %43, %cst_12 {dimension_numbers = #tpu.dot_dimension_numbers<[2], [2], [1], [1], [0, 0, 0, 1, 1, 1], [0], [0]>} : vector<4x8x8xbf16>, vector<4x8x8xbf16>, vector<4x8x8xf32> -> vector<4x8x8xf32>
    "tpu.trace_stop"() : () -> ()
    %cst_13 = arith.constant dense<0xFF800000> : vector<4x8xf32>
    %48 = vector.multi_reduction <maximumf>, %47, %cst_13 [2] : vector<4x8x8xf32> to vector<4x8xf32>
    %49 = vector.shape_cast %48 : vector<4x8xf32> to vector<4x8x1xf32>
    %50 = vector.broadcast %49 : vector<4x8x1xf32> to vector<4x8x8xf32>
    %51 = arith.subf %47, %50 : vector<4x8x8xf32>
    %52 = math.exp %51 : vector<4x8x8xf32>
    %cst_14 = arith.constant dense<0.000000e+00> : vector<4x8xf32>
    %53 = vector.multi_reduction <add>, %52, %cst_14 [2] : vector<4x8x8xf32> to vector<4x8xf32>
    %54 = vector.shape_cast %53 : vector<4x8xf32> to vector<4x8x1xf32>
    %55 = tpu.reciprocal %54 {approx = true} : vector<4x8x1xf32> -> vector<4x8x1xf32>
    %56 = vector.broadcast %55 : vector<4x8x1xf32> to vector<4x8x8xf32>
    %57 = arith.mulf %52, %56 : vector<4x8x8xf32>
    %58 = arith.truncf %57 : vector<4x8x8xf32> to vector<4x8x8xbf16>
    "tpu.trace_start"() <{level = 10 : i32, message = "bqk,bkd->bqd"}> : () -> ()
    %cst_15 = arith.constant dense<0.000000e+00> : vector<4x8x8xf32>
    %59 = tpu.matmul %58, %46, %cst_15 {dimension_numbers = #tpu.dot_dimension_numbers<[2], [1], [1], [2], [0, 0, 0, 1, 1, 2], [0], [0]>} : vector<4x8x8xbf16>, vector<4x8x8xbf16>, vector<4x8x8xf32> -> vector<4x8x8xf32>
    "tpu.trace_stop"() : () -> ()
    %60 = vector.shape_cast %59 : vector<4x8x8xf32> to vector<32x8xf32>
    %61 = vector.extract_strided_slice %12 {offsets = [0, 16], sizes = [32, 8], strides = [1, 1]} : vector<32x32xf32> to vector<32x8xf32>
    %62 = vector.shape_cast %61 : vector<32x8xf32> to vector<4x8x8xf32>
    %63 = arith.truncf %62 : vector<4x8x8xf32> to vector<4x8x8xbf16>
    %64 = vector.extract_strided_slice %13 {offsets = [0, 16], sizes = [32, 8], strides = [1, 1]} : vector<32x32xf32> to vector<32x8xf32>
    %65 = vector.shape_cast %64 : vector<32x8xf32> to vector<4x8x8xf32>
    %66 = arith.truncf %65 : vector<4x8x8xf32> to vector<4x8x8xbf16>
    %67 = vector.extract_strided_slice %14 {offsets = [0, 16], sizes = [32, 8], strides = [1, 1]} : vector<32x32xf32> to vector<32x8xf32>
    %68 = vector.shape_cast %67 : vector<32x8xf32> to vector<4x8x8xf32>
    %69 = arith.truncf %68 : vector<4x8x8xf32> to vector<4x8x8xbf16>
    "tpu.trace_start"() <{level = 10 : i32, message = "bqd,bkd->bqk"}> : () -> ()
    %cst_16 = arith.constant dense<0.000000e+00> : vector<4x8x8xf32>
    %70 = tpu.matmul %63, %66, %cst_16 {dimension_numbers = #tpu.dot_dimension_numbers<[2], [2], [1], [1], [0, 0, 0, 1, 1, 1], [0], [0]>} : vector<4x8x8xbf16>, vector<4x8x8xbf16>, vector<4x8x8xf32> -> vector<4x8x8xf32>
    "tpu.trace_stop"() : () -> ()
    %cst_17 = arith.constant dense<0xFF800000> : vector<4x8xf32>
    %71 = vector.multi_reduction <maximumf>, %70, %cst_17 [2] : vector<4x8x8xf32> to vector<4x8xf32>
    %72 = vector.shape_cast %71 : vector<4x8xf32> to vector<4x8x1xf32>
    %73 = vector.broadcast %72 : vector<4x8x1xf32> to vector<4x8x8xf32>
    %74 = arith.subf %70, %73 : vector<4x8x8xf32>
    %75 = math.exp %74 : vector<4x8x8xf32>
    %cst_18 = arith.constant dense<0.000000e+00> : vector<4x8xf32>
    %76 = vector.multi_reduction <add>, %75, %cst_18 [2] : vector<4x8x8xf32> to vector<4x8xf32>
    %77 = vector.shape_cast %76 : vector<4x8xf32> to vector<4x8x1xf32>
    %78 = tpu.reciprocal %77 {approx = true} : vector<4x8x1xf32> -> vector<4x8x1xf32>
    %79 = vector.broadcast %78 : vector<4x8x1xf32> to vector<4x8x8xf32>
    %80 = arith.mulf %75, %79 : vector<4x8x8xf32>
    %81 = arith.truncf %80 : vector<4x8x8xf32> to vector<4x8x8xbf16>
    "tpu.trace_start"() <{level = 10 : i32, message = "bqk,bkd->bqd"}> : () -> ()
    %cst_19 = arith.constant dense<0.000000e+00> : vector<4x8x8xf32>
    %82 = tpu.matmul %81, %69, %cst_19 {dimension_numbers = #tpu.dot_dimension_numbers<[2], [1], [1], [2], [0, 0, 0, 1, 1, 2], [0], [0]>} : vector<4x8x8xbf16>, vector<4x8x8xbf16>, vector<4x8x8xf32> -> vector<4x8x8xf32>
    "tpu.trace_stop"() : () -> ()
    %83 = vector.shape_cast %82 : vector<4x8x8xf32> to vector<32x8xf32>
    %84 = vector.extract_strided_slice %12 {offsets = [0, 24], sizes = [32, 8], strides = [1, 1]} : vector<32x32xf32> to vector<32x8xf32>
    %85 = vector.shape_cast %84 : vector<32x8xf32> to vector<4x8x8xf32>
    %86 = arith.truncf %85 : vector<4x8x8xf32> to vector<4x8x8xbf16>
    %87 = vector.extract_strided_slice %13 {offsets = [0, 24], sizes = [32, 8], strides = [1, 1]} : vector<32x32xf32> to vector<32x8xf32>
    %88 = vector.shape_cast %87 : vector<32x8xf32> to vector<4x8x8xf32>
    %89 = arith.truncf %88 : vector<4x8x8xf32> to vector<4x8x8xbf16>
    %90 = vector.extract_strided_slice %14 {offsets = [0, 24], sizes = [32, 8], strides = [1, 1]} : vector<32x32xf32> to vector<32x8xf32>
    %91 = vector.shape_cast %90 : vector<32x8xf32> to vector<4x8x8xf32>
    %92 = arith.truncf %91 : vector<4x8x8xf32> to vector<4x8x8xbf16>
    "tpu.trace_start"() <{level = 10 : i32, message = "bqd,bkd->bqk"}> : () -> ()
    %cst_20 = arith.constant dense<0.000000e+00> : vector<4x8x8xf32>
    %93 = tpu.matmul %86, %89, %cst_20 {dimension_numbers = #tpu.dot_dimension_numbers<[2], [2], [1], [1], [0, 0, 0, 1, 1, 1], [0], [0]>} : vector<4x8x8xbf16>, vector<4x8x8xbf16>, vector<4x8x8xf32> -> vector<4x8x8xf32>
    "tpu.trace_stop"() : () -> ()
    %cst_21 = arith.constant dense<0xFF800000> : vector<4x8xf32>
    %94 = vector.multi_reduction <maximumf>, %93, %cst_21 [2] : vector<4x8x8xf32> to vector<4x8xf32>
    %95 = vector.shape_cast %94 : vector<4x8xf32> to vector<4x8x1xf32>
    %96 = vector.broadcast %95 : vector<4x8x1xf32> to vector<4x8x8xf32>
    %97 = arith.subf %93, %96 : vector<4x8x8xf32>
    %98 = math.exp %97 : vector<4x8x8xf32>
    %cst_22 = arith.constant dense<0.000000e+00> : vector<4x8xf32>
    %99 = vector.multi_reduction <add>, %98, %cst_22 [2] : vector<4x8x8xf32> to vector<4x8xf32>
    %100 = vector.shape_cast %99 : vector<4x8xf32> to vector<4x8x1xf32>
    %101 = tpu.reciprocal %100 {approx = true} : vector<4x8x1xf32> -> vector<4x8x1xf32>
    %102 = vector.broadcast %101 : vector<4x8x1xf32> to vector<4x8x8xf32>
    %103 = arith.mulf %98, %102 : vector<4x8x8xf32>
    %104 = arith.truncf %103 : vector<4x8x8xf32> to vector<4x8x8xbf16>
    "tpu.trace_start"() <{level = 10 : i32, message = "bqk,bkd->bqd"}> : () -> ()
    %cst_23 = arith.constant dense<0.000000e+00> : vector<4x8x8xf32>
    %105 = tpu.matmul %104, %92, %cst_23 {dimension_numbers = #tpu.dot_dimension_numbers<[2], [1], [1], [2], [0, 0, 0, 1, 1, 2], [0], [0]>} : vector<4x8x8xbf16>, vector<4x8x8xbf16>, vector<4x8x8xf32> -> vector<4x8x8xf32>
    "tpu.trace_stop"() : () -> ()
    %106 = vector.shape_cast %105 : vector<4x8x8xf32> to vector<32x8xf32>
    %107 = tpu.concatenate %37, %60, %83, %106 in 1 : vector<32x8xf32>, vector<32x8xf32>, vector<32x8xf32>, vector<32x8xf32> -> vector<32x32xf32>
    %108 = arith.truncf %107 : vector<32x32xf32> to vector<32x32xbf16>
    %c0_24 = arith.constant 0 : index
    %c0_25 = arith.constant 0 : index
    %c0_26 = arith.constant 0 : index
    %109 = vector.load %arg5[%c0_24, %c0_25, %c0_26] : memref<1x32x32xbf16, #tpu.memory_space<vmem>>, vector<1x32x32xbf16>
    %110 = vector.shape_cast %109 : vector<1x32x32xbf16> to vector<32x32xbf16>
    %cst_27 = arith.constant dense<0.000000e+00> : vector<32x32xf32>
    %111 = tpu.matmul %108, %110, %cst_27 {dimension_numbers = #tpu.dot_dimension_numbers<[1], [0], [0], [1], [0, 0, 1, 1], [], []>} : vector<32x32xbf16>, vector<32x32xbf16>, vector<32x32xf32> -> vector<32x32xf32>
    %c0_28 = arith.constant 0 : index
    %c0_29 = arith.constant 0 : index
    %c0_30 = arith.constant 0 : index
    %112 = vector.load %arg6[%c0_28, %c0_29, %c0_30] : memref<1x1x32xf32, #tpu.memory_space<vmem>>, vector<1x1x32xf32>
    %113 = vector.shape_cast %112 : vector<1x1x32xf32> to vector<1x32xf32>
    %114 = vector.broadcast %113 : vector<1x32xf32> to vector<32x32xf32>
    %115 = arith.addf %111, %114 : vector<32x32xf32>
    %116 = arith.addf %3, %115 : vector<32x32xf32>
    %c0_31 = arith.constant 0 : index
    %c0_32 = arith.constant 0 : index
    %c0_33 = arith.constant 0 : index
    %117 = vector.load %arg7[%c0_31, %c0_32, %c0_33] : memref<1x1x32xf32, #tpu.memory_space<vmem>>, vector<1x1x32xf32>
    %118 = vector.shape_cast %117 : vector<1x1x32xf32> to vector<1x32xf32>
    %c0_34 = arith.constant 0 : index
    %c0_35 = arith.constant 0 : index
    %c0_36 = arith.constant 0 : index
    %119 = vector.load %arg8[%c0_34, %c0_35, %c0_36] : memref<1x1x32xf32, #tpu.memory_space<vmem>>, vector<1x1x32xf32>
    %120 = vector.shape_cast %119 : vector<1x1x32xf32> to vector<1x32xf32>
    %cst_37 = arith.constant dense<0.000000e+00> : vector<32xf32>
    %121 = vector.multi_reduction <add>, %116, %cst_37 [1] : vector<32x32xf32> to vector<32xf32>
    %122 = vector.shape_cast %121 : vector<32xf32> to vector<32x1xf32>
    %cst_38 = arith.constant 3.200000e+01 : f32
    %123 = vector.broadcast %cst_38 : f32 to vector<32x1xf32>
    %124 = arith.divf %122, %123 : vector<32x1xf32>
    %125 = vector.broadcast %124 : vector<32x1xf32> to vector<32x32xf32>
    %126 = arith.subf %116, %125 : vector<32x32xf32>
    %127 = arith.mulf %126, %126 : vector<32x32xf32>
    %cst_39 = arith.constant dense<0.000000e+00> : vector<32xf32>
    %128 = vector.multi_reduction <add>, %127, %cst_39 [1] : vector<32x32xf32> to vector<32xf32>
    %129 = vector.shape_cast %128 : vector<32xf32> to vector<32x1xf32>
    %cst_40 = arith.constant 3.200000e+01 : f32
    %130 = vector.broadcast %cst_40 : f32 to vector<32x1xf32>
    %131 = arith.divf %129, %130 : vector<32x1xf32>
    %132 = vector.broadcast %124 : vector<32x1xf32> to vector<32x32xf32>
    %133 = arith.subf %116, %132 : vector<32x32xf32>
    %cst_41 = arith.constant 9.99999974E-6 : f32
    %134 = vector.broadcast %cst_41 : f32 to vector<32x1xf32>
    %135 = arith.addf %131, %134 : vector<32x1xf32>
    %136 = math.rsqrt %135 : vector<32x1xf32>
    %137 = vector.broadcast %136 : vector<32x1xf32> to vector<32x32xf32>
    %138 = arith.mulf %133, %137 : vector<32x32xf32>
    %139 = vector.broadcast %118 : vector<1x32xf32> to vector<32x32xf32>
    %140 = arith.mulf %138, %139 : vector<32x32xf32>
    %141 = vector.broadcast %120 : vector<1x32xf32> to vector<32x32xf32>
    %142 = arith.addf %140, %141 : vector<32x32xf32>
    %143 = arith.truncf %142 : vector<32x32xf32> to vector<32x32xbf16>
    %c0_42 = arith.constant 0 : index
    %c0_43 = arith.constant 0 : index
    %c0_44 = arith.constant 0 : index
    %144 = vector.load %arg9[%c0_42, %c0_43, %c0_44] : memref<1x32x64xbf16, #tpu.memory_space<vmem>>, vector<1x32x64xbf16>
    %145 = vector.shape_cast %144 : vector<1x32x64xbf16> to vector<32x64xbf16>
    %cst_45 = arith.constant dense<0.000000e+00> : vector<32x64xf32>
    %146 = tpu.matmul %143, %145, %cst_45 {dimension_numbers = #tpu.dot_dimension_numbers<[1], [0], [0], [1], [0, 0, 1, 1], [], []>} : vector<32x32xbf16>, vector<32x64xbf16>, vector<32x64xf32> -> vector<32x64xf32>
    %c0_46 = arith.constant 0 : index
    %c0_47 = arith.constant 0 : index
    %c0_48 = arith.constant 0 : index
    %147 = vector.load %arg10[%c0_46, %c0_47, %c0_48] : memref<1x1x64xf32, #tpu.memory_space<vmem>>, vector<1x1x64xf32>
    %148 = vector.shape_cast %147 : vector<1x1x64xf32> to vector<1x64xf32>
    %149 = vector.broadcast %148 : vector<1x64xf32> to vector<32x64xf32>
    %150 = arith.addf %146, %149 : vector<32x64xf32>
    %cst_49 = arith.constant 0.000000e+00 : f32
    %151 = vector.broadcast %cst_49 : f32 to vector<32x64xf32>
    %152 = arith.maximumf %150, %151 : vector<32x64xf32>
    %153 = arith.truncf %152 : vector<32x64xf32> to vector<32x64xbf16>
    %c0_50 = arith.constant 0 : index
    %c0_51 = arith.constant 0 : index
    %c0_52 = arith.constant 0 : index
    %154 = vector.load %arg11[%c0_50, %c0_51, %c0_52] : memref<1x64x32xbf16, #tpu.memory_space<vmem>>, vector<1x64x32xbf16>
    %155 = vector.shape_cast %154 : vector<1x64x32xbf16> to vector<64x32xbf16>
    %cst_53 = arith.constant dense<0.000000e+00> : vector<32x32xf32>
    %156 = tpu.matmul %153, %155, %cst_53 {dimension_numbers = #tpu.dot_dimension_numbers<[1], [0], [0], [1], [0, 0, 1, 1], [], []>} : vector<32x64xbf16>, vector<64x32xbf16>, vector<32x32xf32> -> vector<32x32xf32>
    %c0_54 = arith.constant 0 : index
    %c0_55 = arith.constant 0 : index
    %c0_56 = arith.constant 0 : index
    %157 = vector.load %arg12[%c0_54, %c0_55, %c0_56] : memref<1x1x32xf32, #tpu.memory_space<vmem>>, vector<1x1x32xf32>
    %158 = vector.shape_cast %157 : vector<1x1x32xf32> to vector<1x32xf32>
    %159 = vector.broadcast %158 : vector<1x32xf32> to vector<32x32xf32>
    %160 = arith.addf %156, %159 : vector<32x32xf32>
    %161 = arith.addf %142, %160 : vector<32x32xf32>
    %c0_57 = arith.constant 0 : index
    %c0_58 = arith.constant 0 : index
    %c0_59 = arith.constant 0 : index
    %162 = vector.load %arg13[%c0_57, %c0_58, %c0_59] : memref<1x1x32xf32, #tpu.memory_space<vmem>>, vector<1x1x32xf32>
    %163 = vector.shape_cast %162 : vector<1x1x32xf32> to vector<1x32xf32>
    %c0_60 = arith.constant 0 : index
    %c0_61 = arith.constant 0 : index
    %c0_62 = arith.constant 0 : index
    %164 = vector.load %arg14[%c0_60, %c0_61, %c0_62] : memref<1x1x32xf32, #tpu.memory_space<vmem>>, vector<1x1x32xf32>
    %165 = vector.shape_cast %164 : vector<1x1x32xf32> to vector<1x32xf32>
    %cst_63 = arith.constant dense<0.000000e+00> : vector<32xf32>
    %166 = vector.multi_reduction <add>, %161, %cst_63 [1] : vector<32x32xf32> to vector<32xf32>
    %167 = vector.shape_cast %166 : vector<32xf32> to vector<32x1xf32>
    %cst_64 = arith.constant 3.200000e+01 : f32
    %168 = vector.broadcast %cst_64 : f32 to vector<32x1xf32>
    %169 = arith.divf %167, %168 : vector<32x1xf32>
    %170 = vector.broadcast %169 : vector<32x1xf32> to vector<32x32xf32>
    %171 = arith.subf %161, %170 : vector<32x32xf32>
    %172 = arith.mulf %171, %171 : vector<32x32xf32>
    %cst_65 = arith.constant dense<0.000000e+00> : vector<32xf32>
    %173 = vector.multi_reduction <add>, %172, %cst_65 [1] : vector<32x32xf32> to vector<32xf32>
    %174 = vector.shape_cast %173 : vector<32xf32> to vector<32x1xf32>
    %cst_66 = arith.constant 3.200000e+01 : f32
    %175 = vector.broadcast %cst_66 : f32 to vector<32x1xf32>
    %176 = arith.divf %174, %175 : vector<32x1xf32>
    %177 = vector.broadcast %169 : vector<32x1xf32> to vector<32x32xf32>
    %178 = arith.subf %161, %177 : vector<32x32xf32>
    %cst_67 = arith.constant 9.99999974E-6 : f32
    %179 = vector.broadcast %cst_67 : f32 to vector<32x1xf32>
    %180 = arith.addf %176, %179 : vector<32x1xf32>
    %181 = math.rsqrt %180 : vector<32x1xf32>
    %182 = vector.broadcast %181 : vector<32x1xf32> to vector<32x32xf32>
    %183 = arith.mulf %178, %182 : vector<32x32xf32>
    %184 = vector.broadcast %163 : vector<1x32xf32> to vector<32x32xf32>
    %185 = arith.mulf %183, %184 : vector<32x32xf32>
    %186 = vector.broadcast %165 : vector<1x32xf32> to vector<32x32xf32>
    %187 = arith.addf %185, %186 : vector<32x32xf32>
    %c1_i32 = arith.constant 1 : i32
    %188 = arith.cmpi slt, %arg1, %c1_i32 : i32
    %189 = arith.extui %188 : i1 to i32
    %c0_i32_68 = arith.constant 0 : i32
    %190 = arith.cmpi ne, %189, %c0_i32_68 : i32
    scf.if %190 {
      %c0_71 = arith.constant 0 : index
      %c0_72 = arith.constant 0 : index
      %194 = vector.load %arg18[%c0_71, %c0_72] : memref<32x32xf32, #tpu.memory_space<vmem>>, vector<32x32xf32>
      tpu.vector_store %arg18[%c0_71, %c0_72], %187 {strides = array<i32>} : memref<32x32xf32, #tpu.memory_space<vmem>>, vector<32x32xf32>,
    } else {
    }
    %c1_i32_69 = arith.constant 1 : i32
    %191 = arith.cmpi eq, %arg1, %c1_i32_69 : i32
    %192 = arith.extui %191 : i1 to i32
    %c0_i32_70 = arith.constant 0 : i32
    %193 = arith.cmpi ne, %192, %c0_i32_70 : i32
    scf.if %193 {
      %c0_71 = arith.constant 0 : index
      %c0_72 = arith.constant 0 : index
      %194 = vector.load %arg15[%c0_71, %c0_72] : memref<1x32xf32, #tpu.memory_space<vmem>>, vector<1x32xf32>
      %c0_73 = arith.constant 0 : index
      %c0_74 = arith.constant 0 : index
      %195 = vector.load %arg16[%c0_73, %c0_74] : memref<1x32xf32, #tpu.memory_space<vmem>>, vector<1x32xf32>
      %cst_75 = arith.constant dense<0.000000e+00> : vector<32xf32>
      %196 = vector.multi_reduction <add>, %187, %cst_75 [1] : vector<32x32xf32> to vector<32xf32>
      %197 = vector.shape_cast %196 : vector<32xf32> to vector<32x1xf32>
      %cst_76 = arith.constant 3.200000e+01 : f32
      %198 = vector.broadcast %cst_76 : f32 to vector<32x1xf32>
      %199 = arith.divf %197, %198 : vector<32x1xf32>
      %200 = vector.broadcast %199 : vector<32x1xf32> to vector<32x32xf32>
      %201 = arith.subf %187, %200 : vector<32x32xf32>
      %202 = arith.mulf %201, %201 : vector<32x32xf32>
      %cst_77 = arith.constant dense<0.000000e+00> : vector<32xf32>
      %203 = vector.multi_reduction <add>, %202, %cst_77 [1] : vector<32x32xf32> to vector<32xf32>
      %204 = vector.shape_cast %203 : vector<32xf32> to vector<32x1xf32>
      %cst_78 = arith.constant 3.200000e+01 : f32
      %205 = vector.broadcast %cst_78 : f32 to vector<32x1xf32>
      %206 = arith.divf %204, %205 : vector<32x1xf32>
      %207 = vector.broadcast %199 : vector<32x1xf32> to vector<32x32xf32>
      %208 = arith.subf %187, %207 : vector<32x32xf32>
      %cst_79 = arith.constant 9.99999974E-6 : f32
      %209 = vector.broadcast %cst_79 : f32 to vector<32x1xf32>
      %210 = arith.addf %206, %209 : vector<32x1xf32>
      %211 = math.rsqrt %210 : vector<32x1xf32>
      %212 = vector.broadcast %211 : vector<32x1xf32> to vector<32x32xf32>
      %213 = arith.mulf %208, %212 : vector<32x32xf32>
      %214 = vector.broadcast %194 : vector<1x32xf32> to vector<32x32xf32>
      %215 = arith.mulf %213, %214 : vector<32x32xf32>
      %216 = vector.broadcast %195 : vector<1x32xf32> to vector<32x32xf32>
      %217 = arith.addf %215, %216 : vector<32x32xf32>
      %218 = vector.shape_cast %217 : vector<32x32xf32> to vector<4x8x32xf32>
      %c0_80 = arith.constant 0 : index
      %c0_81 = arith.constant 0 : index
      %c0_82 = arith.constant 0 : index
      %219 = vector.load %arg17[%c0_80, %c0_81, %c0_82] : memref<4x8x32xf32, #tpu.memory_space<vmem>>, vector<4x8x32xf32>
      tpu.vector_store %arg17[%c0_80, %c0_81, %c0_82], %218 {strides = array<i32>} : memref<4x8x32xf32, #tpu.memory_space<vmem>>, vector<4x8x32xf32>,
    } else {
    }
    return
  }
  func.func @transform_0(%arg0: i32, %arg1: i32) -> (i32, i32, i32) {
    %c0_i32 = arith.constant 0 : i32
    %c0_i32_0 = arith.constant 0 : i32
    %c0_i32_1 = arith.constant 0 : i32
    return %arg0, %c0_i32, %c0_i32_0 : i32, i32, i32
  }
  func.func @transform_1(%arg0: i32, %arg1: i32) -> (i32, i32, i32) {
    %c0_i32 = arith.constant 0 : i32
    %c0_i32_0 = arith.constant 0 : i32
    %c0_i32_1 = arith.constant 0 : i32
    return %arg1, %c0_i32, %c0_i32_0 : i32, i32, i32
  }
  func.func @transform_2(%arg0: i32, %arg1: i32) -> (i32, i32, i32) {
    %c0_i32 = arith.constant 0 : i32
    %c0_i32_0 = arith.constant 0 : i32
    %c0_i32_1 = arith.constant 0 : i32
    return %arg1, %c0_i32, %c0_i32_0 : i32, i32, i32
  }
  func.func @transform_3(%arg0: i32, %arg1: i32) -> (i32, i32, i32) {
    %c0_i32 = arith.constant 0 : i32
    %c0_i32_0 = arith.constant 0 : i32
    %c0_i32_1 = arith.constant 0 : i32
    return %arg1, %c0_i32, %c0_i32_0 : i32, i32, i32
  }
  func.func @transform_4(%arg0: i32, %arg1: i32) -> (i32, i32, i32) {
    %c0_i32 = arith.constant 0 : i32
    %c0_i32_0 = arith.constant 0 : i32
    %c0_i32_1 = arith.constant 0 : i32
    return %arg1, %c0_i32, %c0_i32_0 : i32, i32, i32
  }
  func.func @transform_5(%arg0: i32, %arg1: i32) -> (i32, i32, i32) {
    %c0_i32 = arith.constant 0 : i32
    %c0_i32_0 = arith.constant 0 : i32
    %c0_i32_1 = arith.constant 0 : i32
    return %arg1, %c0_i32, %c0_i32_0 : i32, i32, i32
  }
  func.func @transform_6(%arg0: i32, %arg1: i32) -> (i32, i32, i32) {
    %c0_i32 = arith.constant 0 : i32
    %c0_i32_0 = arith.constant 0 : i32
    %c0_i32_1 = arith.constant 0 : i32
    return %arg1, %c0_i32, %c0_i32_0 : i32, i32, i32
  }
  func.func @transform_7(%arg0: i32, %arg1: i32) -> (i32, i32, i32) {
    %c0_i32 = arith.constant 0 : i32
    %c0_i32_0 = arith.constant 0 : i32
    %c0_i32_1 = arith.constant 0 : i32
    return %arg1, %c0_i32, %c0_i32_0 : i32, i32, i32
  }
  func.func @transform_8(%arg0: i32, %arg1: i32) -> (i32, i32, i32) {
    %c0_i32 = arith.constant 0 : i32
    %c0_i32_0 = arith.constant 0 : i32
    %c0_i32_1 = arith.constant 0 : i32
    return %arg1, %c0_i32, %c0_i32_0 : i32, i32, i32
  }
  func.func @transform_9(%arg0: i32, %arg1: i32) -> (i32, i32, i32) {
    %c0_i32 = arith.constant 0 : i32
    %c0_i32_0 = arith.constant 0 : i32
    %c0_i32_1 = arith.constant 0 : i32
    return %arg1, %c0_i32, %c0_i32_0 : i32, i32, i32
  }
  func.func @transform_10(%arg0: i32, %arg1: i32) -> (i32, i32, i32) {
    %c0_i32 = arith.constant 0 : i32
    %c0_i32_0 = arith.constant 0 : i32
    %c0_i32_1 = arith.constant 0 : i32
    return %arg1, %c0_i32, %c0_i32_0 : i32, i32, i32
  }
  func.func @transform_11(%arg0: i32, %arg1: i32) -> (i32, i32, i32) {
    %c0_i32 = arith.constant 0 : i32
    %c0_i32_0 = arith.constant 0 : i32
    %c0_i32_1 = arith.constant 0 : i32
    return %arg1, %c0_i32, %c0_i32_0 : i32, i32, i32
  }
  func.func @transform_12(%arg0: i32, %arg1: i32) -> (i32, i32, i32) {
    %c0_i32 = arith.constant 0 : i32
    %c0_i32_0 = arith.constant 0 : i32
    %c0_i32_1 = arith.constant 0 : i32
    return %arg1, %c0_i32, %c0_i32_0 : i32, i32, i32
  }
  func.func @transform_13(%arg0: i32, %arg1: i32) -> (i32, i32) {
    %c0_i32 = arith.constant 0 : i32
    %c0_i32_0 = arith.constant 0 : i32
    %c0_i32_1 = arith.constant 0 : i32
    return %c0_i32, %c0_i32_0 : i32, i32
  }
  func.func @transform_14(%arg0: i32, %arg1: i32) -> (i32, i32) {
    %c0_i32 = arith.constant 0 : i32
    %c0_i32_0 = arith.constant 0 : i32
    %c0_i32_1 = arith.constant 0 : i32
    return %c0_i32, %c0_i32_0 : i32, i32
  }
  func.func @transform_15(%arg0: i32, %arg1: i32) -> (i32, i32, i32) {
    %c0_i32 = arith.constant 0 : i32
    %c0_i32_0 = arith.constant 0 : i32
    %c0_i32_1 = arith.constant 0 : i32
    return %arg0, %c0_i32, %c0_i32_0 : i32, i32, i32
  }
}

</mosaic_0001>

<bundles_post_ra>
// kernel: tpu_custom_call.1
= control target key start
LH: loop header
LB: loop body
LE: loop exit
PB: predicated region body
PF: predicated region fallthrough
CT: control target
= control target key end

     0   :  { %s5162_s0 = inlined_call_operand.vmem [shape: f32[4,8,32], index: 0, kind: input, shape index: {}]   ;;  %s5163_s1 = inlined_call_operand.vmem [shape: bf16[2,32,96], index: 1, kind: input, shape index: {}]   ;;  %s5164_s2 = inlined_call_operand.vmem [shape: f32[2,1,96], index: 2, kind: input, shape index: {}]   ;;  %s5165_s3 = inlined_call_operand.vmem [shape: bf16[2,32,32], index: 3, kind: input, shape index: {}]   ;;  %s5166_s4 = inlined_call_operand.hbm [shape: f32[2,1,32], index: 4, kind: input, shape index: {}]   ;;  %s5167_s5 = inlined_call_operand.hbm [shape: f32[2,1,32], index: 5, kind: input, shape index: {}]   ;;  %s5168_s6 = inlined_call_operand.hbm [shape: f32[2,1,32], index: 6, kind: input, shape index: {}]   ;;  %s5169_s7 = inlined_call_operand.hbm [shape: bf16[2,32,64], index: 7, kind: input, shape index: {}]   ;;  %s5170_s8 = inlined_call_operand.hbm [shape: f32[2,1,64], index: 8, kind: input, shape index: {}]   ;;  %s5171_s9 = inlined_call_operand.vmem [shape: bf16[2,64,32], index: 9, kind: input, shape index: {}]   ;;  %s5172_s10 = inlined_call_operand.vmem [shape: f32[2,1,32], index: 10, kind: input, shape index: {}]   ;;  %s5173_s11 = inlined_call_operand.vmem [shape: f32[2,1,32], index: 11, kind: input, shape index: {}]   ;;  %s5174_s12 = inlined_call_operand.vmem [shape: f32[2,1,32], index: 12, kind: input, shape index: {}]   ;;  %s5175_s13 = inlined_call_operand.vmem [shape: f32[1,32], index: 13, kind: input, shape index: {}]   ;;  %s5176_s14 = inlined_call_operand.vmem [shape: f32[1,32], index: 14, kind: input, shape index: {}]   ;;  %s5177_s15 = inlined_call_operand.hbm [shape: f32[4,8,32], index: 15, kind: output, shape index: {}]  }
   0x1   :  { %5187 = sst [smem:[#allocation21_spill]] %s5162_s0 }
   0x2   :  { %5188 = sst [smem:[#allocation22_spill]] %s5163_s1 }
   0x3   :  { %5189 = sst [smem:[#allocation23_spill]] %s5166_s4 }
   0x4   :  { %5190 = sst [smem:[#allocation24_spill]] %s5167_s5 }
   0x5   :  { %5191 = sst [smem:[#allocation25_spill]] %s5168_s6 }
   0x6   :  { %5192 = sst [smem:[#allocation26_spill]] %s5169_s7 }
   0x7   :  { %5193 = sst [smem:[#allocation27_spill]] %s5171_s9 }
   0x8   :  { %5194 = sst [smem:[#allocation28_spill]] %s5173_s11 }
   0x9   :  { %5195 = sst [smem:[#allocation29_spill]] %s5174_s12 }
   0xa   :  { %5196 = sst [smem:[#allocation30_spill]] %s5175_s13 }
   0xb   :  { %5197 = sst [smem:[#allocation31_spill]] %s5176_s14 }
   0xc   :  { %5198 = sst [smem:[#allocation32_spill]] %s5177_s15 }
   0xd   :  { %20 = vsyncpa [#allocation4], 0 }
   0xe   :  { %22 = vsyncpa [#allocation4 + $0x1], 0 }
   0xf   :  { %23 = vsyncpa [#allocation7], 0 }
  0x10   :  { %25 = vsyncpa [#allocation7 + $0x1], 0 }
  0x11   :  { %26 = vsyncpa [#allocation10], 0 }
  0x12   :  { %28 = vsyncpa [#allocation10 + $0x1], 0 }
  0x13   :  { %29 = vsyncpa [#allocation5], 0  ;;  %s4430_s18 = smov 0   ;;  %s4432_s19 = smov 0  }
  0x14   :  { %s4434_s20 = smov 0   ;;  %s4436_s21 = smov 0  }
  0x15   :  { %s4438_s22 = smov 0   ;;  %s4440_s23 = smov 0  }
  0x16 LB: > { %5199 = sst [smem:[#allocation17_spill]] %s4311_s20  ;;  %s4459_s24 = sadd.s32 4294967295, %s4323_s23   ;;  %s4323_s23 = sphi %s4440_s23, %s35_s23   ;;  %s4319_s22 = sphi %s4438_s22, %s5235_s22   ;;  %s4315_s21 = sphi %s4436_s21, %s5234_s21   ;;  %s4311_s20 = sphi %s4434_s20, %s5233_s20   ;;  %s4307_s19 = sphi %s4432_s19, %s5237_s19   ;;  %s4303_s18 = sphi %s4430_s18, %s5236_s18  }
  0x17   : > { %5200 = sst [smem:[#allocation18_spill]] %s4319_s22  ;;  %s44_s25 = sadd.s32 1, %s4319_s22 }
  0x18   : > { %p45_p0 = scmp.ge.s32.totalorder %s44_s25, 2  ;;  %s158_s26 = sadd.s32 1, %s4311_s20 }
  0x19   : > { %p165_p1 = scmp.ne.s32.totalorder %s4311_s20, %s4307_s19  ;;  %p166_p2 = scmp.eq.s32.totalorder %s4323_s23, 0 }
  0x1a   : > { %s5239_s25 = smov (%p45_p0, %s44_s25), 0  ;;  %p171_p4 = scmp.ne.s32.totalorder %s4307_s19, %s4303_s18 }
  0x1b   : > { %5201 = sst [smem:[#allocation19_spill]] %s5239_s25  ;;  %p167_p3 = por %p166_p2, %p165_p1 }
  0x1c   : > { %s155_s27 = ssub.s32 %s4319_s22, %s5239_s25  ;;  %p172_p5 = scmp.eq.s32.totalorder %s4459_s24, 0 }
  0x1d   : > { %p156_p6 = scmp.eq.s32.totalorder %s155_s27, 0  ;;  %p3882_p8 = scmp.lt.s32.totalorder %s4323_s23, 2 }
  0x1e   : > { %p4472_p7 = por %p172_p5, %p171_p4  ;;  %s4481_s30 = sand.u32 1, %s4311_s20  }
  0x1f   : > { %s4478_s29 = scalar_select %p156_p6, %s4311_s20, %s158_s26  }
  0x20   : > { %s5202_s28 = scalar_select %p4472_p7, 1, 0 }
  0x21   : > { %5203 = sst [smem:[#allocation20_spill]] %s4478_s29  ;;  %s4484_s16 = sshll.u32 %s4319_s22, 4 }
  0x22   : > { %p4486_p9 = pnand %p3882_p8, %p167_p3  ;;  %s5182_s18 = sand.u32 1, %s4323_s23  }
  0x23   : > { %s5205_s5 = sld [smem:[#allocation24_spill]]  ;;  %s528_s26 = scalar_lea.vmem [#allocation6], %s4481_s30 }
  0x24   : > { %s5204_s17 = scalar_select %p4486_p9, 1, 0 }
  0x25   : > { %s535_s29 = sshll.u32 %s528_s26, 4  ;;  %s4503_s20 = scalar_lea.sflag [#allocation7], %s5182_s18  ;;  %s4498_s29 = int_to_ptr.vmem [resolvable:$true] %s535_s29 }
  0x26   : > { %p4509_p12 = pneg %p4486_p9 }
  0x29   : > { %s4495_s15 = scalar_lea.hbm %s5205_s5, %s4484_s16  ;;  %s4090_s26 = scalar_lea.hbm %s5205_s5, 32 }
  0x2a   : > { %s4085_s14 = scalar_lea.hbm %s4495_s15, 16  ;;  %p4091_p1 = scmp.lt.u32.totalorder %s4495_s15, %s5205_s5 }
  0x2b   : > { %p4086_p11 = scmp.ne.s32.totalorder %s4495_s15, %s4085_s14  ;;  %p4092_p2 = scmp.lt.u32.totalorder %s4090_s26, %s4085_s14 }
  0x2c   : > { %p4094_p4 = scmp.lt.u32.totalorder %s4085_s14, %s4495_s15 }
  0x2d   : > { %p4088_p13 = pnand %p4509_p12, %p4086_p11  ;;  %p4093_p3 = por %p4092_p2, %p4091_p1 }
  0x2f   : > { %p4089_p0 = pneg %p4088_p13  ;;  %p4095_p5 = por %p4094_p4, %p4093_p3 }
  0x31   : > { %p4096_p6 = pnand %p4095_p5, %p4089_p0 }
  0x33   : > { %4099 = shalt.err (!%p4096_p6)
}
  0x34   : > { %s4100_s18 = scalar_lea.vmem %s4498_s29, 16  ;;  %s4325_s25 = smov [#allocation6]  }
  0x35   : > { %p4101_p8 = scmp.ne.s32.totalorder %s4498_s29, %s4100_s18  ;;  %s4105_s27 = sshll.u32 %s4325_s25, 4  ;;  %s4106_s27 = int_to_ptr.vmem [resolvable:$false] %s4105_s27 }
  0x36   : > { %s4107_s0 = scalar_lea.vmem %s4106_s27, 32  ;;  %p4108_p10 = scmp.lt.s32.totalorder %s4498_s29, %s4106_s27 }
  0x37   : > { %p4103_p11 = pnand %p4101_p8, %p4509_p12  ;;  %p4109_p7 = scmp.lt.s32.totalorder %s4107_s0, %s4100_s18 }
  0x39   : > { %p4104_p13 = pneg %p4103_p11  ;;  %p4110_p1 = por %p4109_p7, %p4108_p10 }
  0x3b   : > { %p4111_p2 = pnand %p4110_p1, %p4104_p13 }
  0x3d   : > { %4114 = shalt.err (!%p4111_p2)
}
  0x3e   : > { %3872 = dma.hbm_to_vmem [thread:$0]  (!%p4486_p9), %s4495_s15, 16, %s4498_s29, %s4503_s20  }
  0x3f   : > { %p621_p0 = scmp.lt.s32.totalorder %s4323_s23, 3  ;;  %s3459_s12 = sshll.u32 %s4481_s30, 4 }
  0x40   : > { %s3538_s14 = sshll.u32 %s4319_s22, 8  ;;  %p5207_p3 = scmp.ge.s32.totalorder %s4323_s23, 1 }
  0x41   : > { %s5209_s7 = sld [smem:[#allocation26_spill]]  ;;  %s563_s0 = scalar_lea.vmem [#allocation9], %s3459_s12 }
  0x42   : > { %p4538_p4 = pnand %p5207_p3, %p621_p0  ;;  %s570_s5 = sshll.u32 %s563_s0, 4  ;;  %s4547_s5 = int_to_ptr.vmem [resolvable:$true] %s570_s5 }
  0x43   : > { %s5210_s15 = sand.u32 1, %s4323_s23  }
  0x44   : > { %s5208_s18 = scalar_select %p4538_p4, 1, 0 }
  0x45   : > { %s4551_s29 = scalar_lea.sflag [#allocation10], %s5210_s15 }
  0x47   : > { %s4545_s27 = scalar_lea.hbm %s5209_s7, %s3538_s14  ;;  %s4120_s14 = scalar_lea.hbm %s5209_s7, 512 }
  0x48   : > { %s4115_s22 = scalar_lea.hbm %s4545_s27, 256  ;;  %p4121_p6 = scmp.lt.u32.totalorder %s4545_s27, %s5209_s7 }
  0x49   : > { %p4116_p7 = scmp.ne.s32.totalorder %s4545_s27, %s4115_s22  ;;  %p4122_p8 = scmp.lt.u32.totalorder %s4120_s14, %s4115_s22 }
  0x4a   : > { %p4124_p13 = scmp.lt.u32.totalorder %s4115_s22, %s4545_s27 }
  0x4b   : > { %p4118_p10 = pnand %p4116_p7, %p4509_p12  ;;  %p4123_p11 = por %p4122_p8, %p4121_p6 }
  0x4d   : > { %p4119_p5 = pneg %p4118_p10  ;;  %p4125_p1 = por %p4124_p13, %p4123_p11 }
  0x4f   : > { %p4126_p2 = pnand %p4125_p1, %p4119_p5 }
  0x51   : > { %4129 = shalt.err (!%p4126_p2)
}
  0x52   : > { %s4130_s12 = scalar_lea.vmem %s4547_s5, 256  ;;  %s4326_s11 = smov [#allocation9]  }
  0x53   : > { %p4131_p0 = scmp.ne.s32.totalorder %s4547_s5, %s4130_s12  ;;  %s4135_s0 = sshll.u32 %s4326_s11, 4  ;;  %s4136_s0 = int_to_ptr.vmem [resolvable:$false] %s4135_s0 }
  0x54   : > { %s4137_s9 = scalar_lea.vmem %s4136_s0, 512  ;;  %p4138_p10 = scmp.lt.s32.totalorder %s4547_s5, %s4136_s0 }
  0x55   : > { %p4133_p3 = pnand %p4131_p0, %p4509_p12  ;;  %p4139_p4 = scmp.lt.s32.totalorder %s4137_s9, %s4130_s12 }
  0x57   : > { %p4134_p7 = pneg %p4133_p3  ;;  %p4140_p6 = por %p4139_p4, %p4138_p10 }
  0x59   : > { %p4141_p8 = pnand %p4140_p6, %p4134_p7 }
  0x5b   : > { %4144 = shalt.err (!%p4141_p8)
}
  0x5c   : > { %s4327_s22 = smov 64   ;;  %s4328_s15 = smov 4  }
  0x5d   : > { %3878 = dma.hbm_to_vmem [thread:$0]  (!%p4486_p9), %s4545_s27, 256, %s4547_s5, %s4551_s29, %s4327_s22, %s4327_s22, %s4328_s15  }
  0x5e   : > { %s5211_s4 = sld [smem:[#allocation23_spill]]  ;;  %s511_s12 = scalar_lea.vmem [#allocation3], %s4481_s30 }
  0x5f   : > { %s518_s11 = sshll.u32 %s511_s12, 4  ;;  %s509_s0 = scalar_lea.sflag [#allocation4], %s4481_s30  ;;  %s519_s11 = int_to_ptr.vmem [resolvable:$true] %s518_s11 }
  0x64   : > { %s4579_s25 = scalar_lea.hbm %s5211_s4, %s4484_s16  ;;  %s4150_s27 = scalar_lea.hbm %s5211_s4, 32 }
  0x65   : > { %s4145_s9 = scalar_lea.hbm %s4579_s25, 16  ;;  %p4151_p13 = scmp.lt.u32.totalorder %s4579_s25, %s5211_s4 }
  0x66   : > { %p4146_p4 = scmp.ne.s32.totalorder %s4579_s25, %s4145_s9  ;;  %p4152_p1 = scmp.lt.u32.totalorder %s4150_s27, %s4145_s9 }
  0x67   : > { %p4154_p0 = scmp.lt.u32.totalorder %s4145_s9, %s4579_s25 }
  0x68   : > { %p4148_p5 = pnand %p4146_p4, %p4509_p12  ;;  %p4153_p2 = por %p4152_p1, %p4151_p13 }
  0x6a   : > { %p4149_p11 = pneg %p4148_p5  ;;  %p4155_p3 = por %p4154_p0, %p4153_p2 }
  0x6c   : > { %p4156_p7 = pnand %p4155_p3, %p4149_p11 }
  0x6e   : > { %4159 = shalt.err (!%p4156_p7)
}
  0x6f   : > { %s4160_s26 = scalar_lea.vmem %s519_s11, 16  ;;  %s4329_s14 = smov [#allocation3]  }
  0x70   : > { %p4161_p10 = scmp.ne.s32.totalorder %s519_s11, %s4160_s26  ;;  %s4165_s12 = sshll.u32 %s4329_s14, 4  ;;  %s4166_s12 = int_to_ptr.vmem [resolvable:$false] %s4165_s12 }
  0x71   : > { %s4167_s7 = scalar_lea.vmem %s4166_s12, 32  ;;  %p4168_p4 = scmp.lt.s32.totalorder %s519_s11, %s4166_s12 }
  0x72   : > { %p4163_p6 = pnand %p4161_p10, %p4509_p12  ;;  %p4169_p5 = scmp.lt.s32.totalorder %s4167_s7, %s4160_s26 }
  0x74   : > { %p4164_p8 = pneg %p4163_p6  ;;  %p4170_p9 = por %p4169_p5, %p4168_p4 }
  0x76   : > { %p4171_p1 = pnand %p4170_p9, %p4164_p8 }
  0x78   : > { %4174 = shalt.err (!%p4171_p1)
}
  0x79   : > { %p5212_p13 = scmp.ne.s32.totalorder %s5204_s17, 0  ;;  %s5213_s6 = sld [smem:[#allocation25_spill]] }
  0x7a   : > { %s545_s22 = scalar_lea.vmem [#allocation8], %s4481_s30 }
  0x7b   : > { %3869 = dma.hbm_to_vmem [thread:$0]  (!%p5212_p13), %s4579_s25, 16, %s519_s11, %s509_s0  }
  0x7c   : > { %s552_s15 = sshll.u32 %s545_s22, 4  ;;  %s553_s15 = int_to_ptr.vmem [resolvable:$true] %s552_s15 }
  0x7f   : > { %s4604_s27 = scalar_lea.hbm %s5213_s6, %s4484_s16  ;;  %s4180_s25 = scalar_lea.hbm %s5213_s6, 32 }
  0x80   : > { %s4175_s26 = scalar_lea.hbm %s4604_s27, 16  ;;  %p4181_p0 = scmp.lt.u32.totalorder %s4604_s27, %s5213_s6 }
  0x81   : > { %p4176_p9 = scmp.ne.s32.totalorder %s4604_s27, %s4175_s26  ;;  %p4182_p3 = scmp.lt.u32.totalorder %s4180_s25, %s4175_s26 }
  0x82   : > { %p4184_p10 = scmp.lt.u32.totalorder %s4175_s26, %s4604_s27 }
  0x83   : > { %p4178_p11 = pnand %p4176_p9, %p4509_p12  ;;  %p4183_p7 = por %p4182_p3, %p4181_p0 }
  0x85   : > { %p4179_p2 = pneg %p4178_p11  ;;  %p4185_p6 = por %p4184_p10, %p4183_p7 }
  0x87   : > { %p4186_p8 = pnand %p4185_p6, %p4179_p2 }
  0x89   : > { %4189 = shalt.err (!%p4186_p8)
}
  0x8a   : > { %s4190_s7 = scalar_lea.vmem %s553_s15, 16  ;;  %s4330_s9 = smov [#allocation8]  }
  0x8b   : > { %p4191_p4 = scmp.ne.s32.totalorder %s553_s15, %s4190_s7  ;;  %s4195_s5 = sshll.u32 %s4330_s9, 4  ;;  %s4196_s5 = int_to_ptr.vmem [resolvable:$false] %s4195_s5 }
  0x8c   : > { %s4197_s22 = scalar_lea.vmem %s4196_s5, 32  ;;  %p4198_p9 = scmp.lt.s32.totalorder %s553_s15, %s4196_s5 }
  0x8d   : > { %p4193_p5 = pnand %p4191_p4, %p4509_p12  ;;  %p4199_p11 = scmp.lt.s32.totalorder %s4197_s22, %s4190_s7 }
  0x8f   : > { %p4194_p1 = pneg %p4193_p5  ;;  %p4200_p13 = por %p4199_p11, %p4198_p9 }
  0x91   : > { %p4201_p0 = pnand %p4200_p13, %p4194_p1 }
  0x93   : > { %4204 = shalt.err (!%p4201_p0)
}
  0x94   : > { %p5214_p3 = scmp.ne.s32.totalorder %s5204_s17, 0  ;;  %s4629_s12 = scalar_lea.hbm %s5170_s8, %s4484_s16 }
  0x95   : > { %s583_s25 = scalar_lea.vmem [#allocation11], %s4481_s30  ;;  %s4205_s0 = scalar_lea.hbm %s4629_s12, 16 }
  0x96   : > { %3875 = dma.hbm_to_vmem [thread:$0]  (!%p5214_p3), %s4604_s27, 16, %s553_s15, %s4503_s20  }
  0x97   : > { %s590_s11 = sshll.u32 %s583_s25, 4  ;;  %p4206_p13 = scmp.ne.s32.totalorder %s4629_s12, %s4205_s0  ;;  %s591_s11 = int_to_ptr.vmem [resolvable:$true] %s590_s11 }
  0x98   : > { %s4210_s20 = scalar_lea.hbm %s5170_s8, 32  ;;  %p4211_p10 = scmp.lt.u32.totalorder %s4629_s12, %s5170_s8 }
  0x99   : > { %p4208_p2 = pnand %p4206_p13, %p4509_p12  ;;  %p4212_p6 = scmp.lt.u32.totalorder %s4210_s20, %s4205_s0 }
  0x9a   : > { %p4214_p4 = scmp.lt.u32.totalorder %s4205_s0, %s4629_s12 }
  0x9b   : > { %p4209_p7 = pneg %p4208_p2  ;;  %p4213_p8 = por %p4212_p6, %p4211_p10 }
  0x9d   : > { %p4215_p5 = por %p4214_p4, %p4213_p8 }
  0x9f   : > { %p4216_p1 = pnand %p4215_p5, %p4209_p7 }
  0xa1   : > { %4219 = shalt.err (!%p4216_p1)
}
  0xa2   : > { %s4220_s30 = scalar_lea.vmem %s591_s11, 16  ;;  %s4331_s16 = smov [#allocation11]  }
  0xa3   : > { %p4221_p9 = scmp.ne.s32.totalorder %s591_s11, %s4220_s30  ;;  %s4225_s5 = sshll.u32 %s4331_s16, 4  ;;  %s4226_s5 = int_to_ptr.vmem [resolvable:$false] %s4225_s5 }
  0xa4   : > { %s4227_s22 = scalar_lea.vmem %s4226_s5, 32  ;;  %p4228_p13 = scmp.lt.s32.totalorder %s591_s11, %s4226_s5 }
  0xa5   : > { %p4223_p11 = pnand %p4221_p9, %p4509_p12  ;;  %p4229_p2 = scmp.lt.s32.totalorder %s4227_s22, %s4220_s30 }
  0xa7   : > { %p4224_p0 = pneg %p4223_p11  ;;  %p4230_p3 = por %p4229_p2, %p4228_p13 }
  0xa9   : > { %p4231_p6 = pnand %p4230_p3, %p4224_p0 }
  0xab   : > { %4234 = shalt.err (!%p4231_p6)
}
  0xac   : > { %p5215_p10 = scmp.ne.s32.totalorder %s5204_s17, 0  ;;  %p5216_p7 = scmp.ne.s32.totalorder %s5208_s18, 0 }
  0xad   : > { %s4653_s13 = sand.u32 (!%p5216_p7), 1, %s4307_s19   ;;  %p5217_p12 = scmp.ne.s32.totalorder (!%p5216_p7), %s5202_s28, 0 }
  0xae   : > { %3881 = dma.hbm_to_vmem [thread:$0]  (!%p5215_p10), %s4629_s12, 16, %s591_s11, %s4551_s29  }
  0xaf   : > { %625 = sbr.rel (%p5216_p7) target bundleno = 4866 (0x1302), region = 80  ;;  %s628_s26 = scalar_lea.sflag (!%p5216_p7), [#allocation4], %s4653_s13 }
  0xb6   : > { %4286 = dma.done.wait (%p5217_p12), %s628_s26, 16  }
  0xb7   : > { %4288 = vsyncadd (%p5217_p12), %s628_s26, 4294967280  ;;  %s635_s17 = sand.u32 1, %s4459_s24  }
  0xb8   : > { %s636_s29 = scalar_lea.sflag [#allocation7], %s635_s17 }
  0xb9   : > { %4290 = dma.done.wait (%p5217_p12), %s636_s29, 32  }
  0xba   : > { %4292 = vsyncadd (%p5217_p12), %s636_s29, 4294967264  ;;  %s3464_s12 = sshll.u32 %s4653_s13, 4  ;;  %s652_s11 = scalar_lea.sflag [#allocation10], %s635_s17 }
  0xbb   : > { %s4669_s0 = scalar_lea.vmem [#allocation9], %s3464_s12 }
  0xbc   : > { %4294 = dma.done.wait (%p5217_p12), %s652_s11, 272  }
  0xbd   : > { %4296 = vsyncadd (%p5217_p12), %s652_s11, 4294967024  ;;  %p759_p3 = scmp.lt.s32.totalorder %s4315_s21, 1  ;;  %s5218_s1 = sld [smem:[#allocation22_spill]] }
  0xbe   : > { %s5219_s14 = sld [smem:[#allocation27_spill]]  ;;  %s5220_s15 = sld [smem:[#allocation28_spill]] }
  0xbf   : > { %s4677_s7 = scalar_select %p759_p3, %s4315_s21, 1 }
  0xc0   : > { %s5221_s6 = sld [smem:[#allocation29_spill]]  ;;  %p3471_p8 = scmp.ne.s32.totalorder %s4315_s21, 0 }
  0xc1   : > { %s3539_s9 = sshll.u32 %s4677_s7, 4  ;;  %s3541_s17 = sshll.u32 %s4677_s7, 5  ;;  %vm796_vm0 = vcmask (!%p3471_p8), 261120  }
  0xc2   : > { %s4690_s26 = scalar_lea.vmem %s5165_s3, %s3539_s9  ;;  %s779_s11 = scalar_lea.vmem %s5172_s10, %s4677_s7 }
  0xc3   : > { %s763_s16 = scalar_lea.vmem %s5218_s1, %s3539_s9  ;;  %s663_s9 = scalar_lea.vmem [#allocation11], %s4653_s13 }
  0xc4   : > { %s4700_s4 = scalar_lea.vmem %s5219_s14, %s3541_s17  ;;  %s782_s30 = scalar_lea.vmem %s5220_s15, %s4677_s7 }
  0xc5   : > { %791 = sbr.rel (%p3471_p8) target bundleno = 206 (0xce), region = 104  ;;  %s5222_s12 = sld [smem:[#allocation21_spill]] (!%p3471_p8) }
  0xc6   : > { %s785_s5 = scalar_lea.vmem %s5221_s6, %s4677_s7 }
  0xcb   : > { %v792_v0 = vld [vmem:[%s5222_s12] sm:$0xff] (!%p3471_p8)  ;;  %v793_v1 = vld [vmem:[%s5222_s12 + $0x8] sm:$0xff] (!%p3471_p8)  ;;  %v794_v2 = vld [vmem:[%s5222_s12 + $0x10] sm:$0xff] (!%p3471_p8) }
  0xcc   : > { %797 = vst.msk [vmem:[#allocation2] sm:$0xff] %vm796_vm0, %v792_v0  ;;  %798 = vst.msk [vmem:[#allocation2 + $0x8] sm:$0xff] %vm796_vm0, %v793_v1  ;;  %v795_v3 = vld [vmem:[%s5222_s12 + $0x18] sm:$0xff] }
  0xcd   : > { %799 = vst.msk [vmem:[#allocation2 + $0x10] sm:$0xff] %vm796_vm0, %v794_v2  ;;  %800 = vst.msk [vmem:[#allocation2 + $0x18] sm:$0xff] %vm796_vm0, %v795_v3 }
  0xce PF: > { %v3983_v4 = vld [vmem:[%s763_s16] sm:$0xff]   ;;  %v3984_v5 = vld [vmem:[%s763_s16 + $0x8] sm:$0xff]   ;;  %vm830_vm1 = vcmask 261120   ;;  %v4332_v12 = vmov 0.0   ;;  %s5223_s20 = scalar_lea.vmem %s5164_s2, %s4677_s7  ;;  %vm4333_vm2 = vmmov 0   ;;  %s4334_s27 = smov 96  }
  0xcf   : > { %3624 = vmatprep.subr.bf16.mxu0 %v3983_v4  ;;  %3632 = vmatprep.subr.bf16.mxu1 %v4332_v12  ;;  %v3472_v13 = vld [vmem:[%s5223_s20] ss:$0 sm:$0xff]  ;;  %vm893_vm3 = vcmask 64512   ;;  %s4335_s28 = smov 64   ;;  %vm1140_vm4 = vcmask 1043456   ;;  %s4336_s22 = smov 88  }
  0xd0   : > { %3625 = vmatpush3.bf16.msra.mxu0 %v3983_v4  ;;  %3634 = vmatprep.mubr.msk.bf16.mxu1 %vm4333_vm2, %v4332_v12  ;;  %s4337_s29 = smov 120   ;;  %s4338_s18 = smov 56   ;;  %vm2700_vm5 = vcmask 130048   ;;  %vm2705_vm6 = vcmask 195584   ;;  %vm2994_vm7 = vcmask 523264  }
  0xd1   : > { %3626 = vmatprep.subr.bf16.mxu0 %v3984_v5  ;;  %s4339_s14 = smov 80   ;;  %s4340_s25 = smov 112  }
  0xd2   : > { %s4341_s17 = smov 48   ;;  %s4342_s1 = smov 72  }
  0xd3   : > { %s4343_s6 = smov 104   ;;  %s4344_s15 = smov 40  }
  0xd4   : > { %v803_v8 = vld [vmem:[#allocation2 + $0x10] sm:$0xff]  ;;  %v804_v10 = vld [vmem:[#allocation2 + $0x18] sm:$0xff]  ;;  %3627 = vmatpush3.bf16.msra.mxu0 %v3984_v5  ;;  %s4345_s16 = smov 8   ;;  %s4346_s20 = smov 16  }
  0xd5   : > { %v801_v6 = vld [vmem:[#allocation2] sm:$0xff]  ;;  %v802_v7 = vld [vmem:[#allocation2 + $0x8] sm:$0xff]  ;;  %v806_v11 = vpack.c.bf16 %v804_v10, %v803_v8  ;;  %3638 = vmatprep.subr.bf16.mxu0 %v4332_v12  ;;  %p3530_p4 = scmp.ge.s32.totalorder %s4315_s21, 1 }
  0xd6   : > { %v805_v9 = vpack.c.bf16 %v802_v7, %v801_v6 }
  0xd8   : > { %3628 = vmatprep.mubr.msk.bf16.mxu0 %vm830_vm1, %v805_v9 }
  0xd9   : > { %3629 = vmatmul.mubr.msk.bf16.vlgmr.msra.gmra.mrb[0].mxu0 %vm830_vm1, %v806_v11 }
  0xda   : > { %3640 = vmatprep.mubr.msk.bf16.mxu0 %vm4333_vm2, %v4332_v12 }
 0x1ac   : > { %v3630_v14 = vpop.f32.mrb[0].mxu0 }
 0x1ad   : > { %v880_v15 = vadd.f32 %v3630_v14, %v3472_v13  ;;  %v871_v16 = vpop.f32.mrb[1].mxu0 }
 0x1ae   : > { %v872_v17 = vadd.f32 %v3472_v13, %v871_v16  ;;  %v3631_v18 = vpop.f32.mrb[2].mxu0 }
 0x1af   : > { %v4737_v19 = vpack.c.bf16 %v880_v15, %v880_v15  ;;  %v883_v20 = vadd.f32 %v3631_v18, %v3472_v13  ;;  %v874_v21 = vpop.f32.mrb[3].mxu0 }
 0x1b0   : > { %v4739_v22 = vpack.c.bf16 %v872_v17, %v872_v17  ;;  %v875_v23 = vadd.f32 %v3472_v13, %v874_v21 }
 0x1b1   : > { %990 = vrot.lane.b32.xlu1 %v4737_v19, %s4334_s27  ;;  %v4743_v24 = vpack.c.bf16 %v883_v20, %v883_v20 }
 0x1b2   : > { %891 = vrot.lane.b32.xlu0 %v4739_v22, %s4334_s27  ;;  %v4745_v25 = vpack.c.bf16 %v875_v23, %v875_v23 }
 0x1b5   : > { %1039 = vrot.lane.b32.xlu1 %v4743_v24, %s4334_s27 }
 0x1b6   : > { %941 = vrot.lane.b32.xlu0 %v4745_v25, %s4334_s27  ;;  %s4347_s27 = smov 24  }
 0x223   : > { %v991_v28 = vpop.permute.xlu1 %990 }
 0x224   : > { %v892_v26 = vpop.permute.xlu0 %891  ;;  %v996_v31 = vsel %vm893_vm3, %v991_v28, 0 }
 0x225   : > { %v898_v27 = vsel %vm893_vm3, %v892_v26, 0 }
 0x226   : > { %3633 = vmatpush3.bf16.xpose.msra.mxu1 %v898_v27 }
 0x227   : > { %3644 = vmatprep.subr.bf16.mxu1 %v4332_v12  ;;  %v1040_v32 = vpop.permute.xlu1 %1039 }
 0x228   : > { %v942_v29 = vpop.permute.xlu0 %941  ;;  %v1045_v33 = vsel %vm893_vm3, %v1040_v32, 0 }
 0x229   : > { %v947_v30 = vsel %vm893_vm3, %v942_v29, 0 }
 0x22a   : > { %3639 = vmatpush3.bf16.xpose.msra.mxu0 %v947_v30 }
 0x22b   : > { %3650 = vmatprep.subr.bf16.mxu0 %v4332_v12 }
 0x22d   : > { %3635 = vmatmul.mubr.msk.bf16.vlgmr.msra.gmra.mrb[0].mxu1 %vm893_vm3, %v4739_v22 }
 0x22e   : > { %3645 = vmatpush3.bf16.xpose.msra.mxu1 %v996_v31  ;;  %3646 = vmatprep.mubr.msk.bf16.mxu1 %vm4333_vm2, %v4332_v12 }
 0x22f   : > { %3656 = vmatprep.subr.bf16.mxu1 %v4332_v12 }
 0x231   : > { %3641 = vmatmul.mubr.msk.bf16.vlgmr.msra.gmra.mrb[4].mxu0 %vm893_vm3, %v4745_v25 }
 0x232   : > { %3651 = vmatpush3.bf16.xpose.msra.mxu0 %v1045_v33  ;;  %3652 = vmatprep.mubr.msk.bf16.mxu0 %vm4333_vm2, %v4332_v12 }
 0x233   : > { %3662 = vmatprep.subr.bf16.mxu0 %v4332_v12 }
 0x235   : > { %3647 = vmatmul.mubr.msk.bf16.vlgmr.msra.gmra.mrb[4].mxu1 %vm893_vm3, %v4737_v19 }
 0x236   : > { %3658 = vmatprep.mubr.msk.bf16.mxu1 %vm4333_vm2, %v4332_v12 }
 0x239   : > { %3653 = vmatmul.mubr.msk.bf16.vlgmr.msra.gmra.mrb[8].mxu0 %vm893_vm3, %v4743_v24 }
 0x23a   : > { %3664 = vmatprep.mubr.msk.bf16.mxu0 %vm4333_vm2, %v4332_v12 }
 0x300   : > { %v934_v34 = vpop.f32.mrb[0].mxu1 }
 0x301   : > { %v3636_v35 = vpop.f32.mrb[1].mxu1  ;;  %v1087_v36 = vsel %vm893_vm3, %v934_v34, -inf }
 0x302   : > { %1088 = vmax.xlane.f32.xlu0 %v1087_v36  ;;  %v937_v37 = vpop.f32.mrb[2].mxu1 }
 0x303   : > { %v3637_v38 = vpop.f32.mrb[3].mxu1 }
 0x304   : > { %v983_v39 = vpop.f32.mrb[4].mxu0 }
 0x305   : > { %v3642_v40 = vpop.f32.mrb[5].mxu0  ;;  %v1090_v41 = vsel %vm893_vm3, %v983_v39, -inf }
 0x306   : > { %1091 = vmax.xlane.f32.xlu1 %v1090_v41  ;;  %v986_v42 = vpop.f32.mrb[6].mxu0 }
 0x307   : > { %v3643_v43 = vpop.f32.mrb[7].mxu0 }
 0x308   : > { %v1032_v44 = vpop.f32.mrb[4].mxu1 }
 0x309   : > { %v3648_v45 = vpop.f32.mrb[5].mxu1  ;;  %v1093_v46 = vsel %vm893_vm3, %v1032_v44, -inf }
 0x30a   : > { %1094 = vmax.xlane.f32.xlu0 %v1093_v46  ;;  %v1035_v47 = vpop.f32.mrb[6].mxu1 }
 0x30b   : > { %v3649_v48 = vpop.f32.mrb[7].mxu1 }
 0x30c   : > { %v1081_v49 = vpop.f32.mrb[8].mxu0 }
 0x30d   : > { %v3654_v50 = vpop.f32.mrb[9].mxu0  ;;  %v1096_v51 = vsel %vm893_vm3, %v1081_v49, -inf }
 0x30e   : > { %1097 = vmax.xlane.f32.xlu0 %v1096_v51  ;;  %v1084_v52 = vpop.f32.mrb[10].mxu0 }
 0x30f   : > { %v3655_v53 = vpop.f32.mrb[11].mxu0 }
 0x317   : > { %1135 = vrot.lane.b32.xlu1 %v4739_v22, %s4335_s28 }
 0x38f   : > { %v1089_v54 = vpop.xlane.xlu0 %1088 }
 0x390   : > { %v1099_v55 = vsub.f32 %v934_v34, %v1089_v54 }
 0x392   : > { %v1103_v56 = vmul.f32 1.442695, %v1099_v55 }
 0x393   : > { %v1092_v57 = vpop.xlane.xlu1 %1091 }
 0x394   : > { %3993 = vpow2.f32 %v1103_v56  ;;  %v1100_v58 = vsub.f32 %v983_v39, %v1092_v57 }
 0x396   : > { %v1105_v59 = vmul.f32 1.442695, %v1100_v58 }
 0x397   : > { %v1136_v60 = vpop.permute.xlu1 %1135  ;;  %v1095_v2 = vpop.xlane.xlu0 %1094 }
 0x398   : > { %3995 = vpow2.f32 %v1105_v59  ;;  %v1142_v61 = vsel %vm1140_vm4, %v1136_v60, 0  ;;  %v1101_v4 = vsub.f32 %v1032_v44, %v1095_v2 }
 0x399   : > { %3657 = vmatpush3.bf16.msra.mxu1 %v1142_v61 }
 0x39a   : > { %3668 = vmatprep.subr.bf16.mxu1 %v4332_v12  ;;  %v1107_v6 = vmul.f32 1.442695, %v1101_v4 }
 0x39b   : > { %v1098_v3 = vpop.xlane.xlu0 %1097 }
 0x39c   : > { %v1102_v5 = vsub.f32 %v1081_v49, %v1098_v3  ;;  %3997 = vpow2.f32 %v1107_v6 }
 0x39e   : > { %v3994_v62 = vpop.eup %3993  ;;  %v1109_v7 = vmul.f32 1.442695, %v1102_v5 }
 0x39f   : > { %v1111_v63 = vsel %vm893_vm3, %v3994_v62, 0.0 }
 0x3a0   : > { %1112 = vadd.xlane.f32.xlu1 %v1111_v63  ;;  %3999 = vpow2.f32 %v1109_v7 }
 0x3a2   : > { %v3996_v0 = vpop.eup %3995 }
 0x3a3   : > { %v1114_v1 = vsel %vm893_vm3, %v3996_v0, 0.0 }
 0x3a4   : > { %1115 = vadd.xlane.f32.xlu0 %v1114_v1 }
 0x3a6   : > { %v3998_v8 = vpop.eup %3997 }
 0x3a7   : > { %v1117_v10 = vsel %vm893_vm3, %v3998_v8, 0.0 }
 0x3aa   : > { %v4000_v9 = vpop.eup %3999 }
 0x3ab   : > { %v1120_v11 = vsel %vm893_vm3, %v4000_v9, 0.0 }
 0x3b1   : > { %1232 = vrot.lane.b32.xlu1 %v4737_v19, %s4335_s28 }
 0x3b5   : > { %1280 = vrot.lane.b32.xlu1 %v4743_v24, %s4335_s28 }
 0x3ba   : > { %1184 = vrot.lane.b32.xlu0 %v4745_v25, %s4335_s28  ;;  %s5226_s28 = scalar_lea.vmem [#allocation8], %s4653_s13 }
 0x3d9   : > { %1118 = vadd.xlane.f32.xlu1 %v1117_v10  ;;  %1121 = vadd.xlane.f32.xlu0 %v1120_v11 }
 0x3ea   : > { %1380 = vrot.lane.b32.xlu1 %v4745_v25, %s4336_s22 }
 0x3ee   : > { %1378 = vrot.lane.b32.xlu1 %v4745_v25, %s4337_s29 }
 0x3ef   : > { %1330 = vrot.lane.b32.xlu0 %v4739_v22, %s4336_s22 }
 0x3f2   : > { %1480 = vrot.lane.b32.xlu1 %v4743_v24, %s4336_s22 }
 0x3f3   : > { %1328 = vrot.lane.b32.xlu0 %v4739_v22, %s4337_s29 }
 0x3f6   : > { %1478 = vrot.lane.b32.xlu1 %v4743_v24, %s4337_s29 }
 0x3f7   : > { %1430 = vrot.lane.b32.xlu0 %v4737_v19, %s4336_s22 }
 0x3fb   : > { %1428 = vrot.lane.b32.xlu0 %v4737_v19, %s4337_s29 }
 0x42d   : > { %v1113_v13 = vpop.xlane.xlu1 %1112 }
 0x42e   : > { %4001 = vrcp.f32 %v1113_v13 }
 0x431   : > { %v1116_v14 = vpop.xlane.xlu0 %1115  ;;  %v1233_v18 = vpop.permute.xlu1 %1232 }
 0x432   : > { %4003 = vrcp.f32 %v1116_v14  ;;  %v1238_v26 = vsel %vm1140_vm4, %v1233_v18, 0 }
 0x435   : > { %v1185_v15 = vpop.permute.xlu0 %1184  ;;  %v1281_v28 = vpop.permute.xlu1 %1280 }
 0x436   : > { %v1190_v16 = vsel %vm1140_vm4, %v1185_v15, 0  ;;  %v1286_v30 = vsel %vm1140_vm4, %v1281_v28, 0 }
 0x437   : > { %3663 = vmatpush3.bf16.msra.mxu0 %v1190_v16 }
 0x438   : > { %v4002_v17 = vpop.eup %4001  ;;  %3674 = vmatprep.subr.bf16.mxu0 %v4332_v12 }
 0x439   : > { %v1127_v20 = vmul.f32 %v4002_v17, %v3994_v62 }
 0x43b   : > { %v1131_v21 = vpack.c.bf16 %v1127_v20, %v1127_v20 }
 0x43c   : > { %v4004_v23 = vpop.eup %4003 }
 0x43d   : > { %v1128_v27 = vmul.f32 %v4004_v23, %v3996_v0  ;;  %3659 = vmatmul.mubr.msk.bf16.vlgmr.msra.gmra.mrb[8].mxu1 %vm893_vm3, %v1131_v21 }
 0x43e   : > { %3669 = vmatpush3.bf16.msra.mxu1 %v1238_v26  ;;  %3670 = vmatprep.mubr.msk.bf16.mxu1 %vm4333_vm2, %v4332_v12 }
 0x43f   : > { %v1132_v29 = vpack.c.bf16 %v1128_v27, %v1128_v27  ;;  %3680 = vmatprep.subr.bf16.mxu1 %v4332_v12 }
 0x441   : > { %3665 = vmatmul.mubr.msk.bf16.vlgmr.msra.gmra.mrb[12].mxu0 %vm893_vm3, %v1132_v29 }
 0x442   : > { %3675 = vmatpush3.bf16.msra.mxu0 %v1286_v30  ;;  %3676 = vmatprep.mubr.msk.bf16.mxu0 %vm4333_vm2, %v4332_v12 }
 0x443   : > { %3686 = vmatprep.subr.bf16.mxu0 %v4332_v12 }
 0x466   : > { %v1119_v31 = vpop.xlane.xlu1 %1118  ;;  %v1122_v32 = vpop.xlane.xlu0 %1121 }
 0x467   : > { %4005 = vrcp.f32 %v1119_v31 }
 0x468   : > { %4007 = vrcp.f32 %v1122_v32 }
 0x46a   : > { %v1331_v33 = vpop.permute.xlu0 %1330  ;;  %v1381_v34 = vpop.permute.xlu1 %1380 }
 0x46b   : > { %v1336_v42 = vsel %vm893_vm3, %v1331_v33, 0  ;;  %v1386_v44 = vsel %vm893_vm3, %v1381_v34, 0 }
 0x46e   : > { %v1329_v40 = vpop.permute.xlu0 %1328  ;;  %v1379_v43 = vpop.permute.xlu1 %1378 }
 0x471   : > { %v4006_v35 = vpop.eup %4005 }
 0x472   : > { %v4008_v36 = vpop.eup %4007  ;;  %v1129_v37 = vmul.f32 %v4006_v35, %v3998_v8  ;;  %v1431_v45 = vpop.permute.xlu0 %1430 }
 0x473   : > { %v1130_v38 = vmul.f32 %v4008_v36, %v4000_v9  ;;  %v1481_v46 = vpop.permute.xlu1 %1480  ;;  %v1436_v47 = vsel %vm893_vm3, %v1431_v45, 0 }
 0x474   : > { %v1133_v39 = vpack.c.bf16 %v1129_v37, %v1129_v37  ;;  %v1486_v48 = vsel %vm893_vm3, %v1481_v46, 0 }
 0x475   : > { %v1134_v41 = vpack.c.bf16 %v1130_v38, %v1130_v38 }
 0x476   : > { %3671 = vmatmul.mubr.msk.bf16.vlgmr.msra.gmra.mrb[12].mxu1 %vm893_vm3, %v1133_v39  ;;  %v1429_v49 = vpop.permute.xlu0 %1428 }
 0x477   : > { %3677 = vmatmul.mubr.msk.bf16.vlgmr.msra.gmra.mrb[16].mxu0 %vm893_vm3, %v1134_v41  ;;  %3681 = vmatpush3.bf16.xpose.msra.mxu1 %v1336_v42  ;;  %v1479_v50 = vpop.permute.xlu1 %1478 }
 0x478   : > { %3687 = vmatpush3.bf16.xpose.msra.mxu0 %v1386_v44  ;;  %3682 = vmatprep.mubr.msk.bf16.mxu1 %vm4333_vm2, %v4332_v12 }
 0x479   : > { %3688 = vmatprep.mubr.msk.bf16.mxu0 %vm4333_vm2, %v4332_v12  ;;  %3692 = vmatprep.subr.bf16.mxu1 %v4332_v12 }
 0x47a   : > { %3698 = vmatprep.subr.bf16.mxu0 %v4332_v12 }
 0x47e   : > { %3683 = vmatmul.mubr.msk.bf16.vlgmr.msra.gmra.mrb[16].mxu1 %vm893_vm3, %v1329_v40 }
 0x47f   : > { %3689 = vmatmul.mubr.msk.bf16.vlgmr.msra.gmra.mrb[20].mxu0 %vm893_vm3, %v1379_v43  ;;  %3693 = vmatpush3.bf16.xpose.msra.mxu1 %v1436_v47 }
 0x480   : > { %3699 = vmatpush3.bf16.xpose.msra.mxu0 %v1486_v48  ;;  %3694 = vmatprep.mubr.msk.bf16.mxu1 %vm4333_vm2, %v4332_v12 }
 0x481   : > { %3700 = vmatprep.mubr.msk.bf16.mxu0 %vm4333_vm2, %v4332_v12  ;;  %3704 = vmatprep.subr.bf16.mxu1 %v4332_v12 }
 0x482   : > { %3710 = vmatprep.subr.bf16.mxu0 %v4332_v12 }
 0x486   : > { %3695 = vmatmul.mubr.msk.bf16.vlgmr.msra.gmra.mrb[20].mxu1 %vm893_vm3, %v1429_v49 }
 0x487   : > { %3701 = vmatmul.mubr.msk.bf16.vlgmr.msra.gmra.mrb[24].mxu0 %vm893_vm3, %v1479_v50  ;;  %3706 = vmatprep.mubr.msk.bf16.mxu1 %vm4333_vm2, %v4332_v12 }
 0x488   : > { %3712 = vmatprep.mubr.msk.bf16.mxu0 %vm4333_vm2, %v4332_v12 }
 0x510   : > { %v4833_v51 = vpop.f32.mrb[8].mxu1 }
 0x511   : > { %v3660_v52 = vpop.f32.mrb[9].mxu1 }
 0x512   : > { %v1181_v53 = vpop.f32.mrb[10].mxu1 }
 0x513   : > { %v3661_v54 = vpop.f32.mrb[11].mxu1 }
 0x514   : > { %v4835_v55 = vpop.f32.mrb[12].mxu0 }
 0x515   : > { %v3666_v56 = vpop.f32.mrb[13].mxu0 }
 0x516   : > { %v1229_v57 = vpop.f32.mrb[14].mxu0 }
 0x517   : > { %v3667_v58 = vpop.f32.mrb[15].mxu0 }
 0x549   : > { %v4837_v59 = vpop.f32.mrb[12].mxu1 }
 0x54a   : > { %v4839_v60 = vpop.f32.mrb[16].mxu0  ;;  %v3672_v61 = vpop.f32.mrb[13].mxu1 }
 0x54b   : > { %v3678_v62 = vpop.f32.mrb[17].mxu0  ;;  %v1277_v63 = vpop.f32.mrb[14].mxu1 }
 0x54c   : > { %v1325_v0 = vpop.f32.mrb[18].mxu0  ;;  %v3673_v1 = vpop.f32.mrb[15].mxu1 }
 0x54d   : > { %v3679_v2 = vpop.f32.mrb[19].mxu0 }
 0x551   : > { %v1372_v3 = vpop.f32.mrb[16].mxu1 }
 0x552   : > { %v1422_v4 = vpop.f32.mrb[20].mxu0  ;;  %v3684_v5 = vpop.f32.mrb[17].mxu1  ;;  %v1528_v6 = vsel %vm893_vm3, %v1372_v3, -inf }
 0x553   : > { %v3690_v7 = vpop.f32.mrb[21].mxu0  ;;  %v1531_v8 = vsel %vm893_vm3, %v1422_v4, -inf  ;;  %1529 = vmax.xlane.f32.xlu0 %v1528_v6  ;;  %v1375_v9 = vpop.f32.mrb[18].mxu1 }
 0x554   : > { %1532 = vmax.xlane.f32.xlu1 %v1531_v8  ;;  %v1425_v10 = vpop.f32.mrb[22].mxu0  ;;  %v3685_v11 = vpop.f32.mrb[19].mxu1 }
 0x555   : > { %v3691_v13 = vpop.f32.mrb[23].mxu0 }
 0x559   : > { %v1472_v14 = vpop.f32.mrb[20].mxu1 }
 0x55a   : > { %v1522_v15 = vpop.f32.mrb[24].mxu0  ;;  %v3696_v16 = vpop.f32.mrb[21].mxu1  ;;  %v1534_v17 = vsel %vm893_vm3, %v1472_v14, -inf }
 0x55b   : > { %v3702_v18 = vpop.f32.mrb[25].mxu0  ;;  %1535 = vmax.xlane.f32.xlu0 %v1534_v17  ;;  %v1475_v20 = vpop.f32.mrb[22].mxu1  ;;  %v1537_v27 = vsel %vm893_vm3, %v1522_v15, -inf }
 0x55c   : > { %v1525_v21 = vpop.f32.mrb[26].mxu0  ;;  %v3697_v23 = vpop.f32.mrb[23].mxu1 }
 0x55d   : > { %v3703_v26 = vpop.f32.mrb[27].mxu0 }
 0x55f   : > { %1538 = vmax.xlane.f32.xlu0 %v1537_v27 }
 0x565   : > { %1576 = vrot.lane.b32.xlu1 %v4739_v22, %s4338_s18 }
 0x5e0   : > { %v1530_v28 = vpop.xlane.xlu0 %1529 }
 0x5e1   : > { %v1533_v29 = vpop.xlane.xlu1 %1532  ;;  %v1540_v30 = vsub.f32 %v1372_v3, %v1530_v28 }
 0x5e2   : > { %v1541_v31 = vsub.f32 %v1422_v4, %v1533_v29 }
 0x5e3   : > { %v1544_v32 = vmul.f32 1.442695, %v1540_v30 }
 0x5e4   : > { %v1546_v33 = vmul.f32 1.442695, %v1541_v31 }
 0x5e5   : > { %4009 = vpow2.f32 %v1544_v32  ;;  %v1577_v34 = vpop.permute.xlu1 %1576 }
 0x5e6   : > { %4011 = vpow2.f32 %v1546_v33  ;;  %v1582_v35 = vsel %vm1140_vm4, %v1577_v34, 0 }
 0x5e7   : > { %3705 = vmatpush3.bf16.msra.mxu1 %v1582_v35 }
 0x5e8   : > { %3716 = vmatprep.subr.bf16.mxu1 %v4332_v12  ;;  %v1536_v40 = vpop.xlane.xlu0 %1535 }
 0x5e9   : > { %v1542_v43 = vsub.f32 %v1472_v14, %v1536_v40 }
 0x5eb   : > { %v1548_v45 = vmul.f32 1.442695, %v1542_v43 }
 0x5ec   : > { %v1539_v41 = vpop.xlane.xlu0 %1538 }
 0x5ed   : > { %v1543_v42 = vsub.f32 %v1522_v15, %v1539_v41 }
 0x5ef   : > { %v4010_v36 = vpop.eup %4009  ;;  %v1550_v44 = vmul.f32 1.442695, %v1543_v42 }
 0x5f0   : > { %v4012_v37 = vpop.eup %4011  ;;  %v1552_v38 = vsel %vm893_vm3, %v4010_v36, 0.0 }
 0x5f1   : > { %v1555_v39 = vsel %vm893_vm3, %v4012_v37, 0.0  ;;  %1553 = vadd.xlane.f32.xlu1 %v1552_v38  ;;  %4013 = vpow2.f32 %v1550_v44 }
 0x5f2   : > { %1556 = vadd.xlane.f32.xlu0 %v1555_v39  ;;  %4015 = vpow2.f32 %v1548_v45 }
 0x5fb   : > { %v4014_v46 = vpop.eup %4013 }
 0x5fc   : > { %v4016_v47 = vpop.eup %4015  ;;  %v1561_v48 = vsel %vm893_vm3, %v4014_v46, 0.0 }
 0x5fd   : > { %v1558_v49 = vsel %vm893_vm3, %v4016_v47, 0.0 }
 0x602   : > { %1672 = vrot.lane.b32.xlu1 %v4737_v19, %s4338_s18 }
 0x606   : > { %1720 = vrot.lane.b32.xlu1 %v4743_v24, %s4338_s18 }
 0x608   : > { %1624 = vrot.lane.b32.xlu0 %v4745_v25, %s4338_s18 }
 0x627   : > { %1562 = vadd.xlane.f32.xlu0 %v1561_v48 }
 0x62a   : > { %1559 = vadd.xlane.f32.xlu1 %v1558_v49 }
 0x63b   : > { %1820 = vrot.lane.b32.xlu1 %v4745_v25, %s4339_s14 }
 0x63d   : > { %1770 = vrot.lane.b32.xlu0 %v4739_v22, %s4339_s14 }
 0x63f   : > { %1818 = vrot.lane.b32.xlu1 %v4745_v25, %s4340_s25 }
 0x641   : > { %1768 = vrot.lane.b32.xlu0 %v4739_v22, %s4340_s25 }
 0x643   : > { %1920 = vrot.lane.b32.xlu1 %v4743_v24, %s4339_s14 }
 0x645   : > { %1870 = vrot.lane.b32.xlu0 %v4737_v19, %s4339_s14 }
 0x647   : > { %1918 = vrot.lane.b32.xlu1 %v4743_v24, %s4340_s25 }
 0x649   : > { %1868 = vrot.lane.b32.xlu0 %v4737_v19, %s4340_s25 }
 0x67e   : > { %v1554_v50 = vpop.xlane.xlu1 %1553 }
 0x67f   : > { %4017 = vrcp.f32 %v1554_v50  ;;  %v1557_v52 = vpop.xlane.xlu0 %1556 }
 0x680   : > { %4019 = vrcp.f32 %v1557_v52 }
 0x682   : > { %v1673_v56 = vpop.permute.xlu1 %1672 }
 0x683   : > { %v1625_v53 = vpop.permute.xlu0 %1624  ;;  %v1678_v2 = vsel %vm1140_vm4, %v1673_v56, 0 }
 0x684   : > { %v1630_v54 = vsel %vm1140_vm4, %v1625_v53, 0 }
 0x685   : > { %3711 = vmatpush3.bf16.msra.mxu0 %v1630_v54 }
 0x686   : > { %3722 = vmatprep.subr.bf16.mxu0 %v4332_v12  ;;  %v1721_v63 = vpop.permute.xlu1 %1720 }
 0x687   : > { %v1726_v3 = vsel %vm1140_vm4, %v1721_v63, 0 }
 0x689   : > { %v4018_v57 = vpop.eup %4017 }
 0x68a   : > { %v4020_v58 = vpop.eup %4019  ;;  %v1568_v61 = vmul.f32 %v4018_v57, %v4010_v36 }
 0x68b   : > { %v1569_v62 = vmul.f32 %v4020_v58, %v4012_v37 }
 0x68c   : > { %v1572_v0 = vpack.c.bf16 %v1568_v61, %v1568_v61 }
 0x68d   : > { %v1573_v1 = vpack.c.bf16 %v1569_v62, %v1569_v62 }
 0x68e   : > { %3707 = vmatmul.mubr.msk.bf16.vlgmr.msra.gmra.mrb[24].mxu1 %vm893_vm3, %v1572_v0 }
 0x68f   : > { %3713 = vmatmul.mubr.msk.bf16.vlgmr.msra.gmra.mrb[28].mxu0 %vm893_vm3, %v1573_v1  ;;  %3717 = vmatpush3.bf16.msra.mxu1 %v1678_v2 }
 0x690   : > { %3723 = vmatpush3.bf16.msra.mxu0 %v1726_v3  ;;  %3724 = vmatprep.mubr.msk.bf16.mxu0 %vm4333_vm2, %v4332_v12 }
 0x691   : > { %3734 = vmatprep.subr.bf16.mxu0 %v4332_v12  ;;  %3718 = vmatprep.mubr.msk.bf16.mxu1 %vm4333_vm2, %v4332_v12 }
 0x692   : > { %3728 = vmatprep.subr.bf16.mxu1 %v4332_v12 }
 0x6b4   : > { %v1563_v4 = vpop.xlane.xlu0 %1562 }
 0x6b5   : > { %4021 = vrcp.f32 %v1563_v4 }
 0x6b7   : > { %v1560_v5 = vpop.xlane.xlu1 %1559 }
 0x6b8   : > { %4023 = vrcp.f32 %v1560_v5  ;;  %v1771_v9 = vpop.permute.xlu0 %1770 }
 0x6b9   : > { %v1776_v18 = vsel %vm893_vm3, %v1771_v9, 0 }
 0x6bb   : > { %v1821_v6 = vpop.permute.xlu1 %1820 }
 0x6bc   : > { %v1826_v15 = vsel %vm893_vm3, %v1821_v6, 0  ;;  %v1769_v17 = vpop.permute.xlu0 %1768 }
 0x6bf   : > { %v4022_v7 = vpop.eup %4021  ;;  %v1819_v14 = vpop.permute.xlu1 %1818 }
 0x6c0   : > { %v1571_v8 = vmul.f32 %v4022_v7, %v4014_v46  ;;  %v1871_v21 = vpop.permute.xlu0 %1870 }
 0x6c1   : > { %v1876_v26 = vsel %vm893_vm3, %v1871_v21, 0 }
 0x6c2   : > { %v4024_v10 = vpop.eup %4023  ;;  %v1575_v11 = vpack.c.bf16 %v1571_v8, %v1571_v8 }
 0x6c3   : > { %v1570_v13 = vmul.f32 %v4024_v10, %v4016_v47  ;;  %v1921_v20 = vpop.permute.xlu1 %1920 }
 0x6c4   : > { %3725 = vmatmul.mubr.msk.bf16.vlgmr.msra.gmra.mrb[32].mxu0 %vm893_vm3, %v1575_v11  ;;  %v1926_v23 = vsel %vm893_vm3, %v1921_v20, 0  ;;  %v1869_v28 = vpop.permute.xlu0 %1868 }
 0x6c5   : > { %3735 = vmatpush3.bf16.xpose.msra.mxu0 %v1826_v15  ;;  %v1574_v16 = vpack.c.bf16 %v1570_v13, %v1570_v13  ;;  %3736 = vmatprep.mubr.msk.bf16.mxu0 %vm4333_vm2, %v4332_v12 }
 0x6c6   : > { %3746 = vmatprep.subr.bf16.mxu0 %v4332_v12 }
 0x6c7   : > { %3719 = vmatmul.mubr.msk.bf16.vlgmr.msra.gmra.mrb[28].mxu1 %vm893_vm3, %v1574_v16  ;;  %v1919_v27 = vpop.permute.xlu1 %1918 }
 0x6c8   : > { %3729 = vmatpush3.bf16.xpose.msra.mxu1 %v1776_v18  ;;  %3730 = vmatprep.mubr.msk.bf16.mxu1 %vm4333_vm2, %v4332_v12 }
 0x6c9   : > { %3740 = vmatprep.subr.bf16.mxu1 %v4332_v12 }
 0x6cc   : > { %3737 = vmatmul.mubr.msk.bf16.vlgmr.msra.gmra.mrb[36].mxu0 %vm893_vm3, %v1819_v14 }
 0x6cd   : > { %3747 = vmatpush3.bf16.xpose.msra.mxu0 %v1926_v23  ;;  %3748 = vmatprep.mubr.msk.bf16.mxu0 %vm4333_vm2, %v4332_v12 }
 0x6ce   : > { %3758 = vmatprep.subr.bf16.mxu0 %v4332_v12 }
 0x6cf   : > { %3731 = vmatmul.mubr.msk.bf16.vlgmr.msra.gmra.mrb[32].mxu1 %vm893_vm3, %v1769_v17 }
 0x6d0   : > { %3741 = vmatpush3.bf16.xpose.msra.mxu1 %v1876_v26  ;;  %3742 = vmatprep.mubr.msk.bf16.mxu1 %vm4333_vm2, %v4332_v12 }
 0x6d1   : > { %3752 = vmatprep.subr.bf16.mxu1 %v4332_v12 }
 0x6d4   : > { %3749 = vmatmul.mubr.msk.bf16.vlgmr.msra.gmra.mrb[40].mxu0 %vm893_vm3, %v1919_v27 }
 0x6d5   : > { %3760 = vmatprep.mubr.msk.bf16.mxu0 %vm4333_vm2, %v4332_v12 }
 0x6d7   : > { %3743 = vmatmul.mubr.msk.bf16.vlgmr.msra.gmra.mrb[36].mxu1 %vm893_vm3, %v1869_v28 }
 0x6d8   : > { %3754 = vmatprep.mubr.msk.bf16.mxu1 %vm4333_vm2, %v4332_v12 }
 0x761   : > { %v4901_v29 = vpop.f32.mrb[24].mxu1 }
 0x762   : > { %v4903_v30 = vpop.f32.mrb[28].mxu0  ;;  %v3708_v31 = vpop.f32.mrb[25].mxu1 }
 0x763   : > { %v3953_v32 = vpack.i.bf16 %v4903_v30, %v4901_v29  ;;  %v3714_v33 = vpop.f32.mrb[29].mxu0  ;;  %v1621_v34 = vpop.f32.mrb[26].mxu1 }
 0x764   : > { %v1669_v35 = vpop.f32.mrb[30].mxu0  ;;  %v3709_v36 = vpop.f32.mrb[27].mxu1 }
 0x765   : > { %v3715_v37 = vpop.f32.mrb[31].mxu0 }
 0x797   : > { %v4907_v38 = vpop.f32.mrb[32].mxu0 }
 0x798   : > { %v3726_v39 = vpop.f32.mrb[33].mxu0 }
 0x799   : > { %v1765_v40 = vpop.f32.mrb[34].mxu0 }
 0x79a   : > { %v3727_v41 = vpop.f32.mrb[35].mxu0  ;;  %v4909_v42 = vpop.f32.mrb[28].mxu1 }
 0x79b   : > { %v3958_v43 = vpack.i.bf16 %v4907_v38, %v4909_v42  ;;  %v3720_v44 = vpop.f32.mrb[29].mxu1 }
 0x79c   : > { %v1717_v45 = vpop.f32.mrb[30].mxu1 }
 0x79d   : > { %v3721_v46 = vpop.f32.mrb[31].mxu1 }
 0x79f   : > { %v1862_v47 = vpop.f32.mrb[36].mxu0 }
 0x7a0   : > { %v3738_v48 = vpop.f32.mrb[37].mxu0  ;;  %v1971_v49 = vsel %vm893_vm3, %v1862_v47, -inf }
 0x7a1   : > { %1972 = vmax.xlane.f32.xlu1 %v1971_v49  ;;  %v1865_v50 = vpop.f32.mrb[38].mxu0 }
 0x7a2   : > { %v3739_v52 = vpop.f32.mrb[39].mxu0  ;;  %v1812_v53 = vpop.f32.mrb[32].mxu1 }
 0x7a3   : > { %v3732_v54 = vpop.f32.mrb[33].mxu1  ;;  %v1968_v56 = vsel %vm893_vm3, %v1812_v53, -inf }
 0x7a4   : > { %1969 = vmax.xlane.f32.xlu0 %v1968_v56  ;;  %v1815_v57 = vpop.f32.mrb[34].mxu1 }
 0x7a5   : > { %v3733_v58 = vpop.f32.mrb[35].mxu1 }
 0x7a7   : > { %v1962_v61 = vpop.f32.mrb[40].mxu0 }
 0x7a8   : > { %v3750_v62 = vpop.f32.mrb[41].mxu0  ;;  %v1977_v6 = vsel %vm893_vm3, %v1962_v61, -inf }
 0x7a9   : > { %v1965_v63 = vpop.f32.mrb[42].mxu0 }
 0x7aa   : > { %v3751_v0 = vpop.f32.mrb[43].mxu0  ;;  %v1912_v1 = vpop.f32.mrb[36].mxu1 }
 0x7ab   : > { %v3744_v2 = vpop.f32.mrb[37].mxu1  ;;  %v1974_v3 = vsel %vm893_vm3, %v1912_v1, -inf }
 0x7ac   : > { %1975 = vmax.xlane.f32.xlu0 %v1974_v3  ;;  %v1915_v4 = vpop.f32.mrb[38].mxu1 }
 0x7ad   : > { %v3745_v5 = vpop.f32.mrb[39].mxu1 }
 0x7b0   : > { %1978 = vmax.xlane.f32.xlu0 %v1977_v6 }
 0x7b2   : > { %2016 = vrot.lane.b32.xlu1 %v4739_v22, %s4341_s17 }
 0x82e   : > { %v1973_v7 = vpop.xlane.xlu1 %1972 }
 0x82f   : > { %v1981_v8 = vsub.f32 %v1862_v47, %v1973_v7 }
 0x831   : > { %v1986_v9 = vmul.f32 1.442695, %v1981_v8  ;;  %v1970_v10 = vpop.xlane.xlu0 %1969 }
 0x832   : > { %v2017_v11 = vpop.permute.xlu1 %2016  ;;  %v1980_v13 = vsub.f32 %v1812_v53, %v1970_v10 }
 0x833   : > { %4025 = vpow2.f32 %v1986_v9  ;;  %v2022_v14 = vsel %vm1140_vm4, %v2017_v11, 0 }
 0x834   : > { %v1984_v15 = vmul.f32 1.442695, %v1980_v13  ;;  %3753 = vmatpush3.bf16.msra.mxu1 %v2022_v14 }
 0x835   : > { %3764 = vmatprep.subr.bf16.mxu1 %v4332_v12 }
 0x836   : > { %4027 = vpow2.f32 %v1984_v15 }
 0x839   : > { %v1976_v21 = vpop.xlane.xlu0 %1975 }
 0x83a   : > { %v1982_v28 = vsub.f32 %v1912_v1, %v1976_v21 }
 0x83c   : > { %v1988_v31 = vmul.f32 1.442695, %v1982_v28 }
 0x83d   : > { %v4026_v16 = vpop.eup %4025  ;;  %v1979_v23 = vpop.xlane.xlu0 %1978 }
 0x83e   : > { %v1995_v17 = vsel %vm893_vm3, %v4026_v16, 0.0  ;;  %v1983_v26 = vsub.f32 %v1962_v61, %v1979_v23 }
 0x83f   : > { %1996 = vadd.xlane.f32.xlu0 %v1995_v17 }
 0x840   : > { %v4028_v18 = vpop.eup %4027  ;;  %v1990_v27 = vmul.f32 1.442695, %v1983_v26 }
 0x841   : > { %v1992_v20 = vsel %vm893_vm3, %v4028_v18, 0.0 }
 0x842   : > { %1993 = vadd.xlane.f32.xlu1 %v1992_v20  ;;  %4029 = vpow2.f32 %v1990_v27 }
 0x843   : > { %4031 = vpow2.f32 %v1988_v31 }
 0x84c   : > { %v4030_v33 = vpop.eup %4029 }
 0x84d   : > { %v2001_v34 = vsel %vm893_vm3, %v4030_v33, 0.0  ;;  %v4032_v35 = vpop.eup %4031 }
 0x84e   : > { %v1998_v36 = vsel %vm893_vm3, %v4032_v35, 0.0 }
 0x853   : > { %2112 = vrot.lane.b32.xlu1 %v4737_v19, %s4341_s17 }
 0x855   : > { %2064 = vrot.lane.b32.xlu0 %v4745_v25, %s4341_s17 }
 0x857   : > { %2160 = vrot.lane.b32.xlu1 %v4743_v24, %s4341_s17 }
 0x874   : > { %2002 = vadd.xlane.f32.xlu0 %v2001_v34 }
 0x87b   : > { %1999 = vadd.xlane.f32.xlu1 %v1998_v36 }
 0x88a   : > { %2210 = vrot.lane.b32.xlu0 %v4739_v22, %s4342_s1 }
 0x88c   : > { %2260 = vrot.lane.b32.xlu1 %v4745_v25, %s4342_s1 }
 0x88e   : > { %2208 = vrot.lane.b32.xlu0 %v4739_v22, %s4343_s6 }
 0x890   : > { %2258 = vrot.lane.b32.xlu1 %v4745_v25, %s4343_s6 }
 0x892   : > { %2310 = vrot.lane.b32.xlu0 %v4737_v19, %s4342_s1 }
 0x894   : > { %2360 = vrot.lane.b32.xlu1 %v4743_v24, %s4342_s1 }
 0x896   : > { %2308 = vrot.lane.b32.xlu0 %v4737_v19, %s4343_s6 }
 0x898   : > { %2358 = vrot.lane.b32.xlu1 %v4743_v24, %s4343_s6 }
 0x8cc   : > { %v1997_v37 = vpop.xlane.xlu0 %1996 }
 0x8cd   : > { %4033 = vrcp.f32 %v1997_v37 }
 0x8cf   : > { %v1994_v39 = vpop.xlane.xlu1 %1993 }
 0x8d0   : > { %4035 = vrcp.f32 %v1994_v39  ;;  %v2065_v40 = vpop.permute.xlu0 %2064 }
 0x8d1   : > { %v2070_v41 = vsel %vm1140_vm4, %v2065_v40, 0 }
 0x8d2   : > { %3759 = vmatpush3.bf16.msra.mxu0 %v2070_v41 }
 0x8d3   : > { %v2113_v44 = vpop.permute.xlu1 %2112  ;;  %3770 = vmatprep.subr.bf16.mxu0 %v4332_v12 }
 0x8d4   : > { %v2118_v54 = vsel %vm1140_vm4, %v2113_v44, 0 }
 0x8d7   : > { %v4034_v45 = vpop.eup %4033  ;;  %v2161_v47 = vpop.permute.xlu1 %2160 }
 0x8d8   : > { %v2009_v46 = vmul.f32 %v4034_v45, %v4026_v16  ;;  %v2166_v52 = vsel %vm1140_vm4, %v2161_v47, 0 }
 0x8da   : > { %v4036_v48 = vpop.eup %4035  ;;  %v2013_v49 = vpack.c.bf16 %v2009_v46, %v2009_v46 }
 0x8db   : > { %v2008_v50 = vmul.f32 %v4036_v48, %v4028_v18 }
 0x8dc   : > { %3761 = vmatmul.mubr.msk.bf16.vlgmr.msra.gmra.mrb[44].mxu0 %vm893_vm3, %v2013_v49 }
 0x8dd   : > { %3771 = vmatpush3.bf16.msra.mxu0 %v2166_v52  ;;  %v2012_v53 = vpack.c.bf16 %v2008_v50, %v2008_v50  ;;  %3772 = vmatprep.mubr.msk.bf16.mxu0 %vm4333_vm2, %v4332_v12 }
 0x8de   : > { %3782 = vmatprep.subr.bf16.mxu0 %v4332_v12 }
 0x8df   : > { %3755 = vmatmul.mubr.msk.bf16.vlgmr.msra.gmra.mrb[40].mxu1 %vm893_vm3, %v2012_v53 }
 0x8e0   : > { %3765 = vmatpush3.bf16.msra.mxu1 %v2118_v54  ;;  %3766 = vmatprep.mubr.msk.bf16.mxu1 %vm4333_vm2, %v4332_v12 }
 0x8e1   : > { %3776 = vmatprep.subr.bf16.mxu1 %v4332_v12 }
 0x901   : > { %v2003_v56 = vpop.xlane.xlu0 %2002 }
 0x902   : > { %4037 = vrcp.f32 %v2003_v56 }
 0x905   : > { %v2211_v1 = vpop.permute.xlu0 %2210 }
 0x906   : > { %v2216_v8 = vsel %vm893_vm3, %v2211_v1, 0 }
 0x908   : > { %v2000_v57 = vpop.xlane.xlu1 %1999 }
 0x909   : > { %4039 = vrcp.f32 %v2000_v57  ;;  %v2209_v7 = vpop.permute.xlu0 %2208 }
 0x90c   : > { %v4038_v58 = vpop.eup %4037  ;;  %v2261_v61 = vpop.permute.xlu1 %2260 }
 0x90d   : > { %v2011_v62 = vmul.f32 %v4038_v58, %v4030_v33  ;;  %v2266_v2 = vsel %vm893_vm3, %v2261_v61, 0  ;;  %v2311_v10 = vpop.permute.xlu0 %2310 }
 0x90e   : > { %v2316_v11 = vsel %vm893_vm3, %v2311_v10, 0 }
 0x90f   : > { %v2015_v63 = vpack.c.bf16 %v2011_v62, %v2011_v62 }
 0x910   : > { %v2259_v0 = vpop.permute.xlu1 %2258 }
 0x911   : > { %3773 = vmatmul.mubr.msk.bf16.vlgmr.msra.gmra.mrb[48].mxu0 %vm893_vm3, %v2015_v63  ;;  %v2309_v14 = vpop.permute.xlu0 %2308 }
 0x912   : > { %3783 = vmatpush3.bf16.xpose.msra.mxu0 %v2266_v2  ;;  %3784 = vmatprep.mubr.msk.bf16.mxu0 %vm4333_vm2, %v4332_v12 }
 0x913   : > { %v4040_v3 = vpop.eup %4039  ;;  %3794 = vmatprep.subr.bf16.mxu0 %v4332_v12 }
 0x914   : > { %v2010_v4 = vmul.f32 %v4040_v3, %v4032_v35  ;;  %v2361_v5 = vpop.permute.xlu1 %2360 }
 0x915   : > { %v2366_v9 = vsel %vm893_vm3, %v2361_v5, 0 }
 0x916   : > { %v2014_v6 = vpack.c.bf16 %v2010_v4, %v2010_v4 }
 0x918   : > { %3767 = vmatmul.mubr.msk.bf16.vlgmr.msra.gmra.mrb[44].mxu1 %vm893_vm3, %v2014_v6  ;;  %v2359_v13 = vpop.permute.xlu1 %2358 }
 0x919   : > { %3777 = vmatpush3.bf16.xpose.msra.mxu1 %v2216_v8  ;;  %3785 = vmatmul.mubr.msk.bf16.vlgmr.msra.gmra.mrb[52].mxu0 %vm893_vm3, %v2259_v0 }
 0x91a   : > { %3795 = vmatpush3.bf16.xpose.msra.mxu0 %v2366_v9  ;;  %3778 = vmatprep.mubr.msk.bf16.mxu1 %vm4333_vm2, %v4332_v12 }
 0x91b   : > { %3788 = vmatprep.subr.bf16.mxu1 %v4332_v12  ;;  %3796 = vmatprep.mubr.msk.bf16.mxu0 %vm4333_vm2, %v4332_v12 }
 0x91c   : > { %3806 = vmatprep.subr.bf16.mxu0 %v4332_v12 }
 0x920   : > { %3779 = vmatmul.mubr.msk.bf16.vlgmr.msra.gmra.mrb[48].mxu1 %vm893_vm3, %v2209_v7 }
 0x921   : > { %3789 = vmatpush3.bf16.xpose.msra.mxu1 %v2316_v11  ;;  %3797 = vmatmul.mubr.msk.bf16.vlgmr.msra.gmra.mrb[56].mxu0 %vm893_vm3, %v2359_v13 }
 0x922   : > { %3790 = vmatprep.mubr.msk.bf16.mxu1 %vm4333_vm2, %v4332_v12  ;;  %3800 = vmatprep.subr.bf16.mxu1 %v4332_v12 }
 0x923   : > { %3808 = vmatprep.mubr.msk.bf16.mxu0 %vm4333_vm2, %v4332_v12 }
 0x928   : > { %3791 = vmatmul.mubr.msk.bf16.vlgmr.msra.gmra.mrb[52].mxu1 %vm893_vm3, %v2309_v14 }
 0x929   : > { %3802 = vmatprep.mubr.msk.bf16.mxu1 %vm4333_vm2, %v4332_v12 }
 0x9af   : > { %v4973_v15 = vpop.f32.mrb[44].mxu0 }
 0x9b0   : > { %v3762_v16 = vpop.f32.mrb[45].mxu0 }
 0x9b1   : > { %v2109_v17 = vpop.f32.mrb[46].mxu0 }
 0x9b2   : > { %v3763_v18 = vpop.f32.mrb[47].mxu0  ;;  %v4975_v20 = vpop.f32.mrb[40].mxu1 }
 0x9b3   : > { %v3963_v21 = vpack.i.bf16 %v4973_v15, %v4975_v20  ;;  %v3756_v23 = vpop.f32.mrb[41].mxu1 }
 0x9b4   : > { %v2061_v26 = vpop.f32.mrb[42].mxu1 }
 0x9b5   : > { %v3757_v27 = vpop.f32.mrb[43].mxu1 }
 0x9e4   : > { %v4979_v28 = vpop.f32.mrb[48].mxu0 }
 0x9e5   : > { %v3774_v31 = vpop.f32.mrb[49].mxu0 }
 0x9e6   : > { %v2205_v33 = vpop.f32.mrb[50].mxu0 }
 0x9e7   : > { %v3775_v34 = vpop.f32.mrb[51].mxu0 }
 0x9eb   : > { %v4981_v35 = vpop.f32.mrb[44].mxu1 }
 0x9ec   : > { %v3968_v36 = vpack.i.bf16 %v4979_v28, %v4981_v35  ;;  %v2302_v37 = vpop.f32.mrb[52].mxu0  ;;  %v3768_v39 = vpop.f32.mrb[45].mxu1 }
 0x9ed   : > { %v3786_v40 = vpop.f32.mrb[53].mxu0  ;;  %v2157_v41 = vpop.f32.mrb[46].mxu1  ;;  %v2411_v44 = vsel %vm893_vm3, %v2302_v37, -inf }
 0x9ee   : > { %2412 = vmax.xlane.f32.xlu1 %v2411_v44  ;;  %v2305_v45 = vpop.f32.mrb[54].mxu0  ;;  %v3769_v46 = vpop.f32.mrb[47].mxu1 }
 0x9ef   : > { %v3787_v47 = vpop.f32.mrb[55].mxu0 }
 0x9f3   : > { %v2252_v48 = vpop.f32.mrb[48].mxu1 }
 0x9f4   : > { %v2402_v49 = vpop.f32.mrb[56].mxu0  ;;  %v3780_v50 = vpop.f32.mrb[49].mxu1  ;;  %v2408_v52 = vsel %vm893_vm3, %v2252_v48, -inf }
 0x9f5   : > { %v3798_v53 = vpop.f32.mrb[57].mxu0  ;;  %2409 = vmax.xlane.f32.xlu0 %v2408_v52  ;;  %v2255_v54 = vpop.f32.mrb[50].mxu1  ;;  %v2417_v2 = vsel %vm893_vm3, %v2402_v49, -inf }
 0x9f6   : > { %v2405_v56 = vpop.f32.mrb[58].mxu0  ;;  %v3781_v57 = vpop.f32.mrb[51].mxu1  ;;  %v3986_v54 = vld [vmem:[%s4690_s26 + $0x8] sm:$0xff]  }
 0x9f7   : > { %v3799_v58 = vpop.f32.mrb[59].mxu0 }
 0x9fb   : > { %v2352_v61 = vpop.f32.mrb[52].mxu1 }
 0x9fc   : > { %v3792_v62 = vpop.f32.mrb[53].mxu1  ;;  %v2414_v63 = vsel %vm893_vm3, %v2352_v61, -inf }
 0x9fd   : > { %2415 = vmax.xlane.f32.xlu0 %v2414_v63  ;;  %v2355_v0 = vpop.f32.mrb[54].mxu1 }
 0x9fe   : > { %v3793_v1 = vpop.f32.mrb[55].mxu1 }
 0x9ff   : > { %2456 = vrot.lane.b32.xlu1 %v4739_v22, %s4344_s15 }
 0xa01   : > { %2418 = vmax.xlane.f32.xlu0 %v2417_v2 }
 0xa7b   : > { %v2413_v3 = vpop.xlane.xlu1 %2412 }
 0xa7c   : > { %v2421_v4 = vsub.f32 %v2302_v37, %v2413_v3 }
 0xa7e   : > { %v2426_v5 = vmul.f32 1.442695, %v2421_v4 }
 0xa7f   : > { %v2457_v6 = vpop.permute.xlu1 %2456 }
 0xa80   : > { %4041 = vpow2.f32 %v2426_v5  ;;  %v2462_v7 = vsel %vm1140_vm4, %v2457_v6, 0 }
 0xa81   : > { %3801 = vmatpush3.bf16.msra.mxu1 %v2462_v7 }
 0xa82   : > { %v2410_v8 = vpop.xlane.xlu0 %2409  ;;  %3812 = vmatprep.subr.bf16.mxu1 %v4332_v12 }
 0xa83   : > { %v2420_v9 = vsub.f32 %v2252_v48, %v2410_v8  ;;  %v3985_v48 = vld [vmem:[%s4690_s26] sm:$0xff]   ;;  %s5224_s26 = scalar_lea.vmem [#allocation3], %s4653_s13 }
 0xa85   : > { %v2424_v10 = vmul.f32 1.442695, %v2420_v9 }
 0xa87   : > { %4043 = vpow2.f32 %v2424_v10 }
 0xa8a   : > { %v4042_v11 = vpop.eup %4041  ;;  %v2416_v13 = vpop.xlane.xlu0 %2415 }
 0xa8b   : > { %v2422_v22 = vsub.f32 %v2352_v61, %v2416_v13  ;;  %v2435_v14 = vsel %vm893_vm3, %v4042_v11, 0.0 }
 0xa8c   : > { %2436 = vadd.xlane.f32.xlu0 %v2435_v14 }
 0xa8d   : > { %v2428_v16 = vmul.f32 1.442695, %v2422_v22 }
 0xa8e   : > { %v2419_v17 = vpop.xlane.xlu0 %2418 }
 0xa8f   : > { %4045 = vpow2.f32 %v2428_v16  ;;  %v2423_v18 = vsub.f32 %v2402_v49, %v2419_v17 }
 0xa91   : > { %v4044_v23 = vpop.eup %4043  ;;  %v2430_v26 = vmul.f32 1.442695, %v2423_v18 }
 0xa92   : > { %v2432_v27 = vsel %vm893_vm3, %v4044_v23, 0.0 }
 0xa93   : > { %4047 = vpow2.f32 %v2430_v26  ;;  %2433 = vadd.xlane.f32.xlu1 %v2432_v27 }
 0xa99   : > { %v4046_v31 = vpop.eup %4045 }
 0xa9a   : > { %v2438_v33 = vsel %vm893_vm3, %v4046_v31, 0.0 }
 0xa9b   : > { %2439 = vadd.xlane.f32.xlu1 %v2438_v33 }
 0xa9d   : > { %v4048_v34 = vpop.eup %4047 }
 0xa9e   : > { %v2441_v37 = vsel %vm893_vm3, %v4048_v34, 0.0 }
 0xa9f   : > { %2442 = vadd.xlane.f32.xlu0 %v2441_v37 }
 0xaac   : > { %2552 = vrot.lane.b32.xlu1 %v4737_v19, %s4344_s15 }
 0xab0   : > { %2600 = vrot.lane.b32.xlu1 %v4743_v24, %s4344_s15 }
 0xab4   : > { %3959 = vrot.lane.b32.xlu1 %v3958_v43, %s4345_s16 }
 0xab5   : > { %2504 = vrot.lane.b32.xlu0 %v4745_v25, %s4344_s15 }
 0xab8   : > { %3969 = vrot.lane.b32.xlu1 %v3968_v36, %s4346_s20 }
 0xab9   : > { %3954 = vrot.lane.b32.xlu0 %v3953_v32, %s4345_s16 }
 0xabd   : > { %3964 = vrot.lane.b32.xlu0 %v3963_v21, %s4346_s20 }
 0xb19   : > { %v2437_v19 = vpop.xlane.xlu0 %2436 }
 0xb20   : > { %v2434_v24 = vpop.xlane.xlu1 %2433 }
 0xb21   : > { %4049 = vrcp.f32 %v2434_v24 }
 0xb22   : > { %4051 = vrcp.f32 %v2437_v19 }
 0xb28   : > { %v2440_v38 = vpop.xlane.xlu1 %2439 }
 0xb29   : > { %4053 = vrcp.f32 %v2440_v38 }
 0xb2b   : > { %v4050_v25 = vpop.eup %4049 }
 0xb2c   : > { %v4052_v42 = vpop.eup %4051  ;;  %v2448_v43 = vmul.f32 %v4050_v25, %v4044_v23  ;;  %v2553_v28 = vpop.permute.xlu1 %2552 }
 0xb2d   : > { %v2443_v35 = vpop.xlane.xlu0 %2442  ;;  %v2449_v39 = vmul.f32 %v4052_v42, %v4042_v11  ;;  %v2558_v29 = vsel %vm1140_vm4, %v2553_v28, 0 }
 0xb2e   : > { %4055 = vrcp.f32 %v2443_v35  ;;  %v2452_v36 = vpack.c.bf16 %v2448_v43, %v2448_v43 }
 0xb2f   : > { %v2453_v21 = vpack.c.bf16 %v2449_v39, %v2449_v39 }
 0xb30   : > { %3803 = vmatmul.mubr.msk.bf16.vlgmr.msra.gmra.mrb[56].mxu1 %vm893_vm3, %v2452_v36  ;;  %v2601_v15 = vpop.permute.xlu1 %2600 }
 0xb31   : > { %v2505_v30 = vpop.permute.xlu0 %2504  ;;  %3813 = vmatpush3.bf16.msra.mxu1 %v2558_v29  ;;  %3814 = vmatprep.mubr.msk.bf16.mxu1 %vm4333_vm2, %v4332_v12  ;;  %v2606_v41 = vsel %vm1140_vm4, %v2601_v15, 0 }
 0xb32   : > { %v2510_v32 = vsel %vm1140_vm4, %v2505_v30, 0  ;;  %3824 = vmatprep.subr.bf16.mxu1 %v3985_v48 }
 0xb33   : > { %3807 = vmatpush3.bf16.msra.mxu0 %v2510_v32  ;;  %v4054_v20 = vpop.eup %4053  ;;  %v3509_v32 = vld [vmem:[%s5224_s26] ss:$0 sm:$0xff] }
 0xb34   : > { %3818 = vmatprep.subr.bf16.mxu0 %v4332_v12  ;;  %v2450_v40 = vmul.f32 %v4054_v20, %v4046_v31  ;;  %v3960_v9 = vpop.permute.xlu1 %3959 }
 0xb35   : > { %v3955_v7 = vpop.permute.xlu0 %3954  ;;  %v3962_v19 = vunpack.i.h.bf16 %v3960_v9  ;;  %v3961_v24 = vunpack.i.l.bf16 %v3960_v9 }
 0xb36   : > { %3809 = vmatmul.mubr.msk.bf16.vlgmr.msra.gmra.mrb[60].mxu0 %vm893_vm3, %v2453_v21  ;;  %v2454_v44 = vpack.c.bf16 %v2450_v40, %v2450_v40  ;;  %v3957_v10 = vunpack.i.h.bf16 %v3955_v7  ;;  %v3956_v11 = vunpack.i.l.bf16 %v3955_v7 }
 0xb37   : > { %3819 = vmatpush3.bf16.msra.mxu0 %v2606_v41  ;;  %3820 = vmatprep.mubr.msk.bf16.mxu0 %vm4333_vm2, %v4332_v12  ;;  %v2699_v25 = vsel %vm893_vm3, %v4839_v60, %v3962_v19  ;;  %v2698_v42 = vsel %vm893_vm3, %v4837_v59, %v3961_v24 }
 0xb38   : > { %v4056_v45 = vpop.eup %4055  ;;  %3815 = vmatmul.mubr.msk.bf16.vlgmr.msra.gmra.mrb[60].mxu1 %vm893_vm3, %v2454_v44  ;;  %v2697_v16 = vsel %vm893_vm3, %v4835_v55, %v3957_v10  ;;  %v2696_v17 = vsel %vm893_vm3, %v4833_v51, %v3956_v11  ;;  %v3970_v31 = vpop.permute.xlu1 %3969  ;;  %v4073_v44 = vld [vmem:[#allocation2] sm:$0xff] }
 0xb39   : > { %v2451_v46 = vmul.f32 %v4056_v45, %v4048_v34  ;;  %3825 = vmatpush3.bf16.msra.mxu1 %v3985_v48  ;;  %v3965_v8 = vpop.permute.xlu0 %3964  ;;  %v3972_v38 = vunpack.i.h.bf16 %v3970_v31  ;;  %v3971_v55 = vunpack.i.l.bf16 %v3970_v31  ;;  %v4074_v48 = vld [vmem:[#allocation2 + $0x8] sm:$0xff] }
 0xb3a   : > { %3826 = vmatprep.subr.bf16.mxu1 %v3986_v54  ;;  %v3967_v13 = vunpack.i.h.bf16 %v3965_v8  ;;  %v3966_v22 = vunpack.i.l.bf16 %v3965_v8 }
 0xb3b   : > { %v2455_v47 = vpack.c.bf16 %v2451_v46, %v2451_v46  ;;  %v2703_v35 = vsel %vm2700_vm5, %v2698_v42, %v3971_v55  ;;  %v2704_v36 = vsel %vm2700_vm5, %v2699_v25, %v3972_v38 }
 0xb3c   : > { %v2701_v26 = vsel %vm2700_vm5, %v2696_v17, %v3966_v22  ;;  %v2702_v27 = vsel %vm2700_vm5, %v2697_v16, %v3967_v13  ;;  %v3987_v17 = vld [vmem:[%s4669_s0] sm:$0xff]  }
 0xb3d   : > { %3827 = vmatpush3.bf16.msra.mxu1 %v3986_v54  ;;  %3832 = vmatprep.subr.bf16.mxu0 %v3987_v17 }
 0xb3e   : > { %3821 = vmatmul.mubr.msk.bf16.vlgmr.msra.gmra.mrb[64].mxu0 %vm893_vm3, %v2455_v47 }
 0xb3f   : > { %3833 = vmatpush3.bf16.msra.mxu0 %v3987_v17 }
 0xc03   : > { %v2498_v49 = vpop.f32.mrb[56].mxu1 }
 0xc04   : > { %v3804_v50 = vpop.f32.mrb[57].mxu1 }
 0xc05   : > { %v2501_v52 = vpop.f32.mrb[58].mxu1  ;;  %v4075_v50 = vld [vmem:[#allocation2 + $0x10] sm:$0xff] }
 0xc06   : > { %v3805_v53 = vpop.f32.mrb[59].mxu1 }
 0xc09   : > { %v2546_v56 = vpop.f32.mrb[60].mxu0 }
 0xc0a   : > { %v3973_v57 = vpack.i.bf16 %v2546_v56, %v2498_v49  ;;  %v3810_v58 = vpop.f32.mrb[61].mxu0  ;;  %v4076_v56 = vld [vmem:[#allocation2 + $0x18] sm:$0xff] }
 0xc0b   : > { %v2549_v12 = vpop.f32.mrb[62].mxu0  ;;  %v2594_v61 = vpop.f32.mrb[60].mxu1 }
 0xc0c   : > { %3974 = vrot.lane.b32.xlu0 %v3973_v57, %s4347_s27  ;;  %v3811_v62 = vpop.f32.mrb[63].mxu0  ;;  %v3816_v63 = vpop.f32.mrb[61].mxu1 }
 0xc0d   : > { %v2597_v0 = vpop.f32.mrb[62].mxu1 }
 0xc0e   : > { %v3817_v1 = vpop.f32.mrb[63].mxu1 }
 0xc11   : > { %v2642_v2 = vpop.f32.mrb[64].mxu0 }
 0xc12   : > { %v3978_v3 = vpack.i.bf16 %v2642_v2, %v2594_v61  ;;  %v3822_v4 = vpop.f32.mrb[65].mxu0 }
 0xc13   : > { %v2645_v5 = vpop.f32.mrb[66].mxu0 }
 0xc14   : > { %3979 = vrot.lane.b32.xlu1 %v3978_v3, %s4347_s27  ;;  %v3823_v6 = vpop.f32.mrb[67].mxu0 }
 0xc7e   : > { %v3975_v14 = vpop.permute.xlu0 %3974 }
 0xc7f   : > { %v3977_v18 = vunpack.i.h.bf16 %v3975_v14  ;;  %v3976_v23 = vunpack.i.l.bf16 %v3975_v14 }
 0xc81   : > { %v2706_v33 = vsel %vm2705_vm6, %v2701_v26, %v3976_v23  ;;  %v2707_v34 = vsel %vm2705_vm6, %v2702_v27, %v3977_v18  ;;  %v3988_v18 = vld [vmem:[%s4669_s0 + $0x8] sm:$0xff]   ;;  %s5225_s0 = scalar_lea.vmem [#allocation6], %s4653_s13 }
 0xc82   : > { %v2710_v37 = vpack.c.bf16 %v2707_v34, %v2706_v33  ;;  %3834 = vmatprep.subr.bf16.mxu0 %v3988_v18  ;;  %v3989_v23 = vld [vmem:[%s4700_s4] sm:$0xff]   ;;  %v3990_v26 = vld [vmem:[%s4700_s4 + $0x8] sm:$0xff]  }
 0xc83   : > { %3835 = vmatpush3.bf16.msra.mxu0 %v3988_v18  ;;  %3840 = vmatprep.subr.bf16.mxu1 %v3989_v23 }
 0xc84   : > { %3828 = vmatprep.mubr.msk.bf16.mxu1 %vm830_vm1, %v2710_v37 }
 0xc86   : > { %v3980_v51 = vpop.permute.xlu1 %3979 }
 0xc87   : > { %v3982_v43 = vunpack.i.h.bf16 %v3980_v51  ;;  %v3981_v28 = vunpack.i.l.bf16 %v3980_v51 }
 0xc89   : > { %v2709_v39 = vsel %vm2705_vm6, %v2704_v36, %v3982_v43  ;;  %v2708_v29 = vsel %vm2705_vm6, %v2703_v35, %v3981_v28  ;;  %v3514_v28 = vld [vmem:[%s5225_s0] ss:$0 sm:$0xff] }
 0xc8a   : > { %v2711_v30 = vpack.c.bf16 %v2709_v39, %v2708_v29 }
 0xc8c   : > { %3829 = vmatmul.mubr.msk.bf16.vlgmr.msra.gmra.mrb[64].mxu1 %vm830_vm1, %v2711_v30 }
 0xc8d   : > { %3841 = vmatpush3.bf16.msra.mxu1 %v3989_v23 }
 0xc8e   : > { %3842 = vmatprep.subr.bf16.mxu1 %v3990_v26 }
 0xc91   : > { %3843 = vmatpush3.bf16.msra.mxu1 %v3990_v26 }
 0xd5f   : > { %v3830_v15 = vpop.f32.mrb[64].mxu1 }
 0xd60   : > { %v2775_v60 = vpop.f32.mrb[65].mxu1  ;;  %v2784_v20 = vadd.f32 %v3830_v15, %v3509_v32 }
 0xd61   : > { %v2776_v21 = vadd.f32 %v3509_v32, %v2775_v60  ;;  %v3831_v59 = vpop.f32.mrb[66].mxu1 }
 0xd62   : > { %v2778_v40 = vpop.f32.mrb[67].mxu1  ;;  %v2787_v46 = vadd.f32 %v3831_v59, %v3509_v32  ;;  %v2792_v52 = vadd.f32 %v4075_v50, %v2784_v20  ;;  %v3992_v50 = vld [vmem:[%s4700_s4 + $0x18] sm:$0xff]  }
 0xd63   : > { %v2779_v41 = vadd.f32 %v3509_v32, %v2778_v40  ;;  %v2790_v45 = vadd.f32 %v4073_v44, %v2776_v21  ;;  %v3515_v32 = vld [vmem:[%s5226_s28] ss:$0 sm:$0xff] }
 0xd64   : > { %v2802_v54 = vsel %vm830_vm1, %v2792_v52, 0.0  ;;  %v2793_v57 = vadd.f32 %v4076_v56, %v2787_v46 }
 0xd65   : > { %v2796_v47 = vsel %vm830_vm1, %v2790_v45, 0.0  ;;  %v2791_v49 = vadd.f32 %v4074_v48, %v2779_v41 }
 0xd66   : > { %2797 = vadd.xlane.f32.xlu0 %v2796_v47  ;;  %v2805_v58 = vsel %vm830_vm1, %v2793_v57, 0.0 }
 0xd67   : > { %v2799_v53 = vsel %vm830_vm1, %v2791_v49, 0.0 }
 0xd68   : > { %2800 = vadd.xlane.f32.xlu1 %v2799_v53 }
 0xd6a   : > { %2803 = vadd.xlane.f32.xlu0 %v2802_v54 }
 0xd6e   : > { %2806 = vadd.xlane.f32.xlu0 %v2805_v58 }
 0xdf3   : > { %v2798_v12 = vpop.xlane.xlu0 %2797 }
 0xdf4   : > { %v2809_v61 = vmul.f32 0.03125, %v2798_v12 }
 0xdf5   : > { %v2801_v62 = vpop.xlane.xlu1 %2800 }
 0xdf6   : > { %v2813_v63 = vsub.f32 %v2790_v45, %v2809_v61  ;;  %v2810_v0 = vmul.f32 0.03125, %v2801_v62 }
 0xdf7   : > { %v2804_v1 = vpop.xlane.xlu0 %2803 }
 0xdf8   : > { %v2814_v2 = vsub.f32 %v2791_v49, %v2810_v0  ;;  %v2811_v3 = vmul.f32 0.03125, %v2804_v1  ;;  %v2817_v4 = vmul.f32 %v2813_v63, %v2813_v63  ;;  %v3991_v49 = vld [vmem:[%s4700_s4 + $0x10] sm:$0xff]  }
 0xdf9   : > { %3844 = vmatprep.subr.bf16.mxu1 %v3991_v49 }
 0xdfa   : > { %v2815_v5 = vsub.f32 %v2792_v52, %v2811_v3  ;;  %v2821_v6 = vsel %vm830_vm1, %v2817_v4, 0.0  ;;  %v2818_v7 = vmul.f32 %v2814_v2, %v2814_v2  ;;  %3845 = vmatpush3.bf16.msra.mxu1 %v3991_v49  ;;  %v3516_v52 = vld [vmem:[%s663_s9] ss:$0 sm:$0xff] }
 0xdfb   : > { %2822 = vadd.xlane.f32.xlu1 %v2821_v6  ;;  %v2807_v8 = vpop.xlane.xlu0 %2806  ;;  %3846 = vmatprep.subr.bf16.mxu1 %v3992_v50 }
 0xdfc   : > { %v2812_v9 = vmul.f32 0.03125, %v2807_v8  ;;  %v2824_v10 = vsel %vm830_vm1, %v2818_v7, 0.0  ;;  %v2819_v11 = vmul.f32 %v2815_v5, %v2815_v5 }
 0xdfd   : > { %2825 = vadd.xlane.f32.xlu0 %v2824_v10 }
 0xdfe   : > { %v2816_v13 = vsub.f32 %v2793_v57, %v2812_v9  ;;  %v2827_v22 = vsel %vm830_vm1, %v2819_v11, 0.0  ;;  %3847 = vmatpush3.bf16.msra.mxu1 %v3992_v50 }
 0xdff   : > { %2828 = vadd.xlane.f32.xlu1 %v2827_v22 }
 0xe00   : > { %v2820_v14 = vmul.f32 %v2816_v13, %v2816_v13 }
 0xe02   : > { %v2830_v16 = vsel %vm830_vm1, %v2820_v14, 0.0 }
 0xe03   : > { %2831 = vadd.xlane.f32.xlu0 %v2830_v16 }
 0xe88   : > { %v2823_v27 = vpop.xlane.xlu1 %2822 }
 0xe89   : > { %v2833_v31 = vmul.f32 0.03125, %v2823_v27 }
 0xe8a   : > { %v2826_v33 = vpop.xlane.xlu0 %2825 }
 0xe8b   : > { %v2837_v34 = vadd.f32 1e-05, %v2833_v31  ;;  %v2834_v37 = vmul.f32 0.03125, %v2826_v33 }
 0xe8c   : > { %v2829_v19 = vpop.xlane.xlu1 %2828 }
 0xe8d   : > { %4057 = vrsqrt.f32 %v2837_v34  ;;  %v2838_v24 = vadd.f32 1e-05, %v2834_v37  ;;  %v2835_v38 = vmul.f32 0.03125, %v2829_v19 }
 0xe8f   : > { %4059 = vrsqrt.f32 %v2838_v24  ;;  %v2839_v55 = vadd.f32 1e-05, %v2835_v38 }
 0xe90   : > { %v2832_v51 = vpop.xlane.xlu0 %2831 }
 0xe91   : > { %4061 = vrsqrt.f32 %v2839_v55  ;;  %v2836_v25 = vmul.f32 0.03125, %v2832_v51 }
 0xe93   : > { %v2840_v42 = vadd.f32 1e-05, %v2836_v25 }
 0xe95   : > { %4063 = vrsqrt.f32 %v2840_v42 }
 0xe97   : > { %v4058_v43 = vpop.eup %4057 }
 0xe98   : > { %v2845_v35 = vmul.f32 %v4058_v43, %v2813_v63 }
 0xe99   : > { %v4060_v36 = vpop.eup %4059 }
 0xe9a   : > { %v2846_v39 = vmul.f32 %v4060_v36, %v2814_v2  ;;  %v2855_v29 = vmul.f32 %v3514_v28, %v2845_v35 }
 0xe9b   : > { %v4062_v30 = vpop.eup %4061 }
 0xe9c   : > { %v2847_v15 = vmul.f32 %v4062_v30, %v2815_v5  ;;  %v2856_v60 = vmul.f32 %v3514_v28, %v2846_v39  ;;  %v2865_v20 = vadd.f32 %v3515_v32, %v2855_v29  ;;  %v3521_v5 = vld [vmem:[%s779_s11] ss:$0 sm:$0xff] }
 0xe9e   : > { %v2866_v21 = vadd.f32 %v3515_v32, %v2856_v60  ;;  %v2857_v40 = vmul.f32 %v3514_v28, %v2847_v15 }
 0xe9f   : > { %v4064_v59 = vpop.eup %4063 }
 0xea0   : > { %v2848_v41 = vmul.f32 %v4064_v59, %v2816_v13  ;;  %v2869_v44 = vpack.c.bf16 %v2866_v21, %v2865_v20  ;;  %v2867_v46 = vadd.f32 %v3515_v32, %v2857_v40 }
 0xea2   : > { %v2858_v45 = vmul.f32 %v3514_v28, %v2848_v41  ;;  %3836 = vmatprep.mubr.msk.bf16.mxu0 %vm830_vm1, %v2869_v44 }
 0xea4   : > { %v2868_v47 = vadd.f32 %v3515_v32, %v2858_v45 }
 0xea6   : > { %v2870_v48 = vpack.c.bf16 %v2868_v47, %v2867_v46 }
 0xea8   : > { %3837 = vmatmul.mubr.msk.bf16.vlgmr.msra.gmra.mrb[68].mxu0 %vm830_vm1, %v2870_v48 }
 0xf7b   : > { %v3838_v53 = vpop.f32.mrb[68].mxu0 }
 0xf7c   : > { %v2943_v54 = vadd.f32 %v3838_v53, %v3516_v52  ;;  %v2934_v56 = vpop.f32.mrb[69].mxu0  ;;  %v3528_v53 = vld [vmem:[%s782_s30] ss:$0 sm:$0xff] }
 0xf7d   : > { %v2935_v57 = vadd.f32 %v3516_v52, %v2934_v56  ;;  %v3839_v58 = vpop.f32.mrb[70].mxu0 }
 0xf7e   : > { %v2946_v12 = vadd.f32 %v3839_v58, %v3516_v52  ;;  %v2937_v61 = vpop.f32.mrb[71].mxu0  ;;  %v2951_v63 = vmax.f32 %v2943_v54, 0.0 }
 0xf7f   : > { %v2938_v62 = vadd.f32 %v3516_v52, %v2937_v61  ;;  %v2949_v1 = vmax.f32 %v2935_v57, 0.0  ;;  %v3529_v57 = vld [vmem:[%s785_s5] ss:$0 sm:$0xff] }
 0xf80   : > { %v2952_v0 = vmax.f32 %v2946_v12, 0.0 }
 0xf81   : > { %v2950_v2 = vmax.f32 %v2938_v62, 0.0 }
 0xf82   : > { %v2954_v3 = vpack.c.bf16 %v2952_v0, %v2951_v63 }
 0xf83   : > { %v2953_v4 = vpack.c.bf16 %v2950_v2, %v2949_v1 }
 0xf85   : > { %3848 = vmatprep.mubr.msk.bf16.mxu1 %vm2994_vm7, %v2953_v4 }
 0xf86   : > { %3849 = vmatmul.mubr.msk.bf16.vlgmr.msra.gmra.mrb[68].mxu1 %vm2994_vm7, %v2954_v3 }
0x1059   : > { %v3850_v6 = vpop.f32.mrb[68].mxu1 }
0x105a   : > { %v3035_v7 = vpop.f32.mrb[69].mxu1  ;;  %v3044_v8 = vadd.f32 %v3850_v6, %v3521_v5 }
0x105b   : > { %v3036_v9 = vadd.f32 %v3521_v5, %v3035_v7  ;;  %v3851_v10 = vpop.f32.mrb[70].mxu1 }
0x105c   : > { %v3038_v11 = vpop.f32.mrb[71].mxu1  ;;  %v3047_v13 = vadd.f32 %v3851_v10, %v3521_v5  ;;  %v3052_v18 = vadd.f32 %v3044_v8, %v2867_v46 }
0x105d   : > { %v3039_v22 = vadd.f32 %v3521_v5, %v3038_v11  ;;  %v3050_v14 = vadd.f32 %v3036_v9, %v2865_v20 }
0x105e   : > { %v3053_v26 = vadd.f32 %v3047_v13, %v2868_v47  ;;  %v3062_v27 = vsel %vm830_vm1, %v3052_v18, 0.0 }
0x105f   : > { %v3056_v16 = vsel %vm830_vm1, %v3050_v14, 0.0  ;;  %v3051_v17 = vadd.f32 %v3039_v22, %v2866_v21 }
0x1060   : > { %3057 = vadd.xlane.f32.xlu1 %v3056_v16  ;;  %v3065_v31 = vsel %vm830_vm1, %v3053_v26, 0.0 }
0x1061   : > { %v3059_v23 = vsel %vm830_vm1, %v3051_v17, 0.0 }
0x1062   : > { %3060 = vadd.xlane.f32.xlu0 %v3059_v23 }
0x1064   : > { %3063 = vadd.xlane.f32.xlu1 %v3062_v27 }
0x1066   : > { %3066 = vadd.xlane.f32.xlu0 %v3065_v31 }
0x10ed   : > { %v3058_v33 = vpop.xlane.xlu1 %3057 }
0x10ee   : > { %v3068_v34 = vmul.f32 0.03125, %v3058_v33 }
0x10ef   : > { %v3061_v37 = vpop.xlane.xlu0 %3060 }
0x10f0   : > { %v3072_v19 = vsub.f32 %v3050_v14, %v3068_v34  ;;  %v3069_v24 = vmul.f32 0.03125, %v3061_v37 }
0x10f1   : > { %v3064_v38 = vpop.xlane.xlu1 %3063 }
0x10f2   : > { %v3073_v55 = vsub.f32 %v3051_v17, %v3069_v24  ;;  %v3070_v51 = vmul.f32 0.03125, %v3064_v38  ;;  %v3076_v25 = vmul.f32 %v3072_v19, %v3072_v19 }
0x10f3   : > { %v3067_v42 = vpop.xlane.xlu0 %3066 }
0x10f4   : > { %v3074_v43 = vsub.f32 %v3052_v18, %v3070_v51  ;;  %v3071_v28 = vmul.f32 0.03125, %v3067_v42  ;;  %v3080_v35 = vsel %vm830_vm1, %v3076_v25, 0.0  ;;  %v3077_v36 = vmul.f32 %v3073_v55, %v3073_v55 }
0x10f5   : > { %3081 = vadd.xlane.f32.xlu1 %v3080_v35 }
0x10f6   : > { %v3075_v39 = vsub.f32 %v3053_v26, %v3071_v28  ;;  %v3083_v29 = vsel %vm830_vm1, %v3077_v36, 0.0  ;;  %v3078_v30 = vmul.f32 %v3074_v43, %v3074_v43 }
0x10f7   : > { %3084 = vadd.xlane.f32.xlu0 %v3083_v29 }
0x10f8   : > { %v3086_v32 = vsel %vm830_vm1, %v3078_v30, 0.0  ;;  %v3079_v15 = vmul.f32 %v3075_v39, %v3075_v39 }
0x10f9   : > { %3087 = vadd.xlane.f32.xlu1 %v3086_v32 }
0x10fa   : > { %v3089_v60 = vsel %vm830_vm1, %v3079_v15, 0.0 }
0x10fb   : > { %3090 = vadd.xlane.f32.xlu0 %v3089_v60 }
0x1182   : > { %v3082_v20 = vpop.xlane.xlu1 %3081 }
0x1183   : > { %v3092_v21 = vmul.f32 0.03125, %v3082_v20 }
0x1184   : > { %v3085_v59 = vpop.xlane.xlu0 %3084 }
0x1185   : > { %v3096_v40 = vadd.f32 1e-05, %v3092_v21  ;;  %v3093_v41 = vmul.f32 0.03125, %v3085_v59 }
0x1186   : > { %v3088_v44 = vpop.xlane.xlu1 %3087 }
0x1187   : > { %4065 = vrsqrt.f32 %v3096_v40  ;;  %v3097_v45 = vadd.f32 1e-05, %v3093_v41  ;;  %v3094_v46 = vmul.f32 0.03125, %v3088_v44 }
0x1188   : > { %v3091_v47 = vpop.xlane.xlu0 %3090 }
0x1189   : > { %4067 = vrsqrt.f32 %v3097_v45  ;;  %v3098_v48 = vadd.f32 1e-05, %v3094_v46  ;;  %v3095_v49 = vmul.f32 0.03125, %v3091_v47 }
0x118b   : > { %4069 = vrsqrt.f32 %v3098_v48  ;;  %v3099_v50 = vadd.f32 1e-05, %v3095_v49 }
0x118d   : > { %4071 = vrsqrt.f32 %v3099_v50 }
0x1191   : > { %v4066_v52 = vpop.eup %4065 }
0x1192   : > { %v3104_v54 = vmul.f32 %v4066_v52, %v3072_v19 }
0x1193   : > { %v4068_v56 = vpop.eup %4067 }
0x1194   : > { %v3114_v58 = vmul.f32 %v3528_v53, %v3104_v54  ;;  %v3105_v12 = vmul.f32 %v4068_v56, %v3073_v55 }
0x1195   : > { %v4070_v61 = vpop.eup %4069 }
0x1196   : > { %v3124_v62 = vadd.f32 %v3529_v57, %v3114_v58  ;;  %v3115_v63 = vmul.f32 %v3528_v53, %v3105_v12  ;;  %v3106_v0 = vmul.f32 %v4070_v61, %v3074_v43  ;;  %3131 = sbr.rel (%p3530_p4) target bundleno = 4511 (0x119f), region = 108 }
0x1197   : > { %v4072_v1 = vpop.eup %4071 }
0x1198   : > { %v3125_v2 = vadd.f32 %v3529_v57, %v3115_v63  ;;  %v3116_v3 = vmul.f32 %v3528_v53, %v3106_v0  ;;  %v3107_v4 = vmul.f32 %v4072_v1, %v3075_v39  ;;  %3132 = vst.msk [vmem:[#allocation2] sm:$0xff] (!%p3530_p4), %vm830_vm1, %v3124_v62 }
0x119a   : > { %v3126_v5 = vadd.f32 %v3529_v57, %v3116_v3  ;;  %v3117_v6 = vmul.f32 %v3528_v53, %v3107_v4  ;;  %3133 = vst.msk [vmem:[#allocation2 + $0x8] sm:$0xff] (!%p3530_p4), %vm830_vm1, %v3125_v2 }
0x119c   : > { %v3127_v7 = vadd.f32 %v3529_v57, %v3117_v6  ;;  %3134 = vst.msk [vmem:[#allocation2 + $0x10] sm:$0xff] (!%p3530_p4), %vm830_vm1, %v3126_v5 }
0x119e   : > { %3135 = vst.msk [vmem:[#allocation2 + $0x18] sm:$0xff] %vm830_vm1, %v3127_v7 }
0x119f PF: > { %p3531_p5 = scmp.ne.s32.totalorder %s4315_s21, 1 }
0x11a0   : > { %v3142_v8 = vsel (!%p3531_p5), %vm830_vm1, %v3124_v62, 0.0  ;;  %v3148_v9 = vsel (!%p3531_p5), %vm830_vm1, %v3126_v5, 0.0  ;;  %v3145_v10 = vsel (!%p3531_p5), %vm830_vm1, %v3125_v2, 0.0  ;;  %v3151_v11 = vsel (!%p3531_p5), %vm830_vm1, %v3127_v7, 0.0  ;;  %s5229_s30 = sld [smem:[#allocation30_spill]] (!%p3531_p5)  ;;  %s5230_s17 = sld [smem:[#allocation31_spill]] (!%p3531_p5) }
0x11a1   : > { %3139 = sbr.rel (%p3531_p5) target bundleno = 4834 (0x12e2), region = 112  ;;  %3143 = vadd.xlane.f32.xlu0 (!%p3531_p5), %v3142_v8  ;;  %3149 = vadd.xlane.f32.xlu1 (!%p3531_p5), %v3148_v9 }
0x11a5   : > { %3146 = vadd.xlane.f32.xlu0 (!%p3531_p5), %v3145_v10  ;;  %3152 = vadd.xlane.f32.xlu1 (!%p3531_p5), %v3151_v11 }
0x11a6   : > { %v3532_v40 = vld [vmem:[%s5229_s30] ss:$0 sm:$0xff] (!%p3531_p5) }
0x11a7   : > { %v3533_v44 = vld [vmem:[%s5230_s17] ss:$0 sm:$0xff] (!%p3531_p5) }
0x122e   : > { %v3144_v13 = vpop.xlane.xlu0 %3143  ;;  %v3150_v22 = vpop.xlane.xlu1 %3149 }
0x122f   : > { %v3154_v14 = vmul.f32 0.03125, %v3144_v13  ;;  %v3156_v16 = vmul.f32 0.03125, %v3150_v22 }
0x1231   : > { %v3158_v17 = vsub.f32 %v3124_v62, %v3154_v14  ;;  %v3160_v18 = vsub.f32 %v3126_v5, %v3156_v16 }
0x1232   : > { %v3147_v23 = vpop.xlane.xlu0 %3146  ;;  %v3153_v26 = vpop.xlane.xlu1 %3152 }
0x1233   : > { %v3155_v27 = vmul.f32 0.03125, %v3147_v23  ;;  %v3157_v31 = vmul.f32 0.03125, %v3153_v26  ;;  %v3162_v33 = vmul.f32 %v3158_v17, %v3158_v17  ;;  %v3164_v34 = vmul.f32 %v3160_v18, %v3160_v18 }
0x1235   : > { %v3159_v37 = vsub.f32 %v3125_v2, %v3155_v27  ;;  %v3161_v19 = vsub.f32 %v3127_v7, %v3157_v31  ;;  %v3166_v24 = vsel %vm830_vm1, %v3162_v33, 0.0  ;;  %v3172_v38 = vsel %vm830_vm1, %v3164_v34, 0.0 }
0x1236   : > { %3167 = vadd.xlane.f32.xlu0 %v3166_v24 }
0x1237   : > { %v3163_v55 = vmul.f32 %v3159_v37, %v3159_v37  ;;  %v3165_v51 = vmul.f32 %v3161_v19, %v3161_v19 }
0x1239   : > { %v3169_v25 = vsel %vm830_vm1, %v3163_v55, 0.0  ;;  %v3175_v42 = vsel %vm830_vm1, %v3165_v51, 0.0 }
0x123a   : > { %3173 = vadd.xlane.f32.xlu0 %v3172_v38  ;;  %3170 = vadd.xlane.f32.xlu1 %v3169_v25 }
0x123e   : > { %3176 = vadd.xlane.f32.xlu1 %v3175_v42 }
0x12c3   : > { %v3168_v43 = vpop.xlane.xlu0 %3167 }
0x12c4   : > { %v3178_v28 = vmul.f32 0.03125, %v3168_v43 }
0x12c6   : > { %v3182_v35 = vadd.f32 1e-05, %v3178_v28 }
0x12c7   : > { %v3171_v36 = vpop.xlane.xlu1 %3170  ;;  %v3174_v39 = vpop.xlane.xlu0 %3173 }
0x12c8   : > { %4077 = vrsqrt.f32 %v3182_v35  ;;  %v3179_v29 = vmul.f32 0.03125, %v3171_v36  ;;  %v3180_v30 = vmul.f32 0.03125, %v3174_v39 }
0x12ca   : > { %v3183_v32 = vadd.f32 1e-05, %v3179_v29  ;;  %v3184_v15 = vadd.f32 1e-05, %v3180_v30 }
0x12cb   : > { %v3177_v60 = vpop.xlane.xlu1 %3176 }
0x12cc   : > { %4079 = vrsqrt.f32 %v3183_v32  ;;  %v3181_v20 = vmul.f32 0.03125, %v3177_v60 }
0x12cd   : > { %4081 = vrsqrt.f32 %v3184_v15 }
0x12ce   : > { %v3185_v21 = vadd.f32 1e-05, %v3181_v20 }
0x12d0   : > { %4083 = vrsqrt.f32 %v3185_v21 }
0x12d2   : > { %v4078_v59 = vpop.eup %4077 }
0x12d3   : > { %v3190_v41 = vmul.f32 %v4078_v59, %v3158_v17 }
0x12d5   : > { %v3200_v45 = vmul.f32 %v3532_v40, %v3190_v41 }
0x12d6   : > { %v4080_v46 = vpop.eup %4079 }
0x12d7   : > { %v4082_v47 = vpop.eup %4081  ;;  %v3210_v48 = vadd.f32 %v3533_v44, %v3200_v45  ;;  %v3191_v49 = vmul.f32 %v4080_v46, %v3159_v37 }
0x12d8   : > { %v3192_v50 = vmul.f32 %v4082_v47, %v3160_v18 }
0x12d9   : > { %3214 = vst.msk [vmem:[#allocation12] sm:$0xff] %vm830_vm1, %v3210_v48  ;;  %v3201_v52 = vmul.f32 %v3532_v40, %v3191_v49 }
0x12da   : > { %v4084_v53 = vpop.eup %4083  ;;  %v3202_v54 = vmul.f32 %v3532_v40, %v3192_v50 }
0x12db   : > { %v3211_v56 = vadd.f32 %v3533_v44, %v3201_v52  ;;  %v3193_v57 = vmul.f32 %v4084_v53, %v3161_v19 }
0x12dc   : > { %v3212_v58 = vadd.f32 %v3533_v44, %v3202_v54 }
0x12dd   : > { %3215 = vst.msk [vmem:[#allocation12 + $0x8] sm:$0xff] %vm830_vm1, %v3211_v56  ;;  %v3203_v12 = vmul.f32 %v3532_v40, %v3193_v57 }
0x12de   : > { %3216 = vst.msk [vmem:[#allocation12 + $0x10] sm:$0xff] %vm830_vm1, %v3212_v58 }
0x12df   : > { %v3213_v61 = vadd.f32 %v3533_v44, %v3203_v12 }
0x12e1   : > { %3217 = vst.msk [vmem:[#allocation12 + $0x18] sm:$0xff] %vm830_vm1, %v3213_v61 }
0x12e2 PF: > { %p3883_p1 = scmp.eq.s32.totalorder %s4459_s24, 1  ;;  %s4348_s1 = smov [#allocation12]  }
0x12e3   : > { %s3227_s6 = sshll.u32 %s4348_s1, 4  ;;  %s3228_s6 = int_to_ptr.vmem [resolvable:$true] %s3227_s6 }
0x12e4   : > { %s4235_s15 = scalar_lea.vmem %s3228_s6, 512  ;;  %p4242_p13 = scmp.lt.s32.totalorder %s3228_s6, %s3228_s6 }
0x12e5   : > { %p4236_p9 = scmp.ne.s32.totalorder %s3228_s6, %s4235_s15  ;;  %p4243_p2 = scmp.lt.s32.totalorder %s4235_s15, %s4235_s15 }
0x12e7   : > { %p4237_p11 = pnand %p4236_p9, %p3883_p1  ;;  %p4244_p6 = por %p4243_p2, %p4242_p13 }
0x12e9   : > { %p4238_p0 = pneg %p4237_p11 }
0x12eb   : > { %p4245_p10 = pnand %p4244_p6, %p4238_p0 }
0x12ed   : > { %4248 = shalt.err (!%p4245_p10)
}
0x12ee   : > { %s5231_s26 = sld [smem:[#allocation32_spill]] }
0x12f4   : > { %s4249_s0 = scalar_lea.hbm %s5231_s26, 512 }
0x12f5   : > { %p4250_p7 = scmp.ne.s32.totalorder %s5231_s26, %s4249_s0  ;;  %p4255_p8 = scmp.lt.u32.totalorder %s4249_s0, %s5231_s26 }
0x12f7   : > { %p4251_p12 = pnand %p4250_p7, %p3883_p1 }
0x12f9   : > { %p4252_p3 = pneg %p4251_p12 }
0x12fb   : > { %p4257_p4 = pnand %p4255_p8, %p4252_p3 }
0x12fd   : > { %4260 = shalt.err (!%p4257_p4)
}
0x12fe   : > { %s4349_s9 = smov 128  }
0x12ff   : > { %3863 = dma.vmem_to_hbm [thread:$0]  (%p3883_p1), %s3228_s6, 512, %s5231_s26, [#allocation5], %s4349_s9, %s4349_s9, %s4345_s16  }
0x1300   : > { %4298 = dma.done.wait (%p3883_p1), [#allocation5], 512  }
0x1301   : > { %4300 = vsyncadd (%p3883_p1), [#allocation5], 4294966784 }
0x1302 PF: > { %s35_s23 = sadd.s32 1, %s4323_s23   ;;  %s5232_s14 = sld [smem:[#allocation17_spill]] }
0x1303   : > { %p32_p5 = scmp.ge.s32.totalorder %s35_s23, 4   ;;  %s5233_s20 = sld [smem:[#allocation20_spill]] }
0x1304   : > { %s5234_s21 = sld [smem:[#allocation18_spill]]  ;;  %s5235_s22 = sld [smem:[#allocation19_spill]] }
0x1305   : > { %s5236_s18 = smov %s4307_s19  ;;  %34 = sbr.rel (!%p32_p5) target bundleno = 22 (0x16), region = 202 }
0x1308   : > { %s5237_s19 = smov %s5232_s14 }
0x130c   :  { %3243 = vsyncpa [#allocation4], 1 }
0x130d   :  { %3245 = vsyncpa [#allocation4 + $0x1], 1 }
0x130e   :  { %3246 = vsyncpa [#allocation7], 1 }
0x130f   :  { %3248 = vsyncpa [#allocation7 + $0x1], 1 }
0x1310   :  { %3249 = vsyncpa [#allocation10], 1 }
0x1311   :  { %3251 = vsyncpa [#allocation10 + $0x1], 1 }
0x1312   :  { %3252 = vsyncpa [#allocation5], 1 }
0x1313   :  { %3254 = vsyncpa [#allocation5 + $0x1], 1 }

</bundles_post_ra>
